<compile_context>
chip_gen: v7x
topology: tpu7x:2x2x1
jax: 0.10.0
libtpu: 0.0.40
codegen_flags: <defaults>
</compile_context>

<pallas_src>
import jax
import jax.numpy as jnp
from jax.experimental import pallas as pl
from jax.experimental.pallas import tpu as pltpu

# Small shapes consistent with the module (GRU path, large=True -> 2 layers).
NUM_IN = 16
NUM_HIDDEN = 32
BATCH = 8          # == batch_size used in hidden.view(batch_size, -1)
SEQ = 8
SZ = 18            # GRU path => sz = 18, first embed layer width = sz + 14 = 32
BN_EPS = 1e-5


# ------------------------- fused GRU + head kernel -------------------------- #
def birnn_kernel(x_ref,                                   # (T*B, F) time-major, flattened
                 wih0_ref, whh0_ref, bi0_ref, bhn0_ref,   # layer-0 packed gates
                 wih1_ref, whh1_ref, bi1_ref, bhn1_ref,   # layer-1 packed gates
                 g0_ref, g1_ref,                          # (B, 2B) flatten-selection matrices
                 w1a_ref, w1b_ref, b1_ref,                # Linear1 (BN folded), split on 2H axis
                 w2_ref, b2_ref,                          # Linear2 (BN folded)
                 w3_ref, b3_ref,                          # Linear3
                 out_ref):
    H = NUM_HIDDEN
    B = BATCH

    # Hoisted layer-0 input projection for ALL timesteps: (T*B, 3H), one MXU push.
    gi0_all = (jnp.dot(x_ref[...], wih0_ref[...], preferred_element_type=jnp.float32)
               + bi0_ref[...])

    whh0 = whh0_ref[...]
    wih1 = wih1_ref[...]
    whh1 = whh1_ref[...]
    bi1 = bi1_ref[...]
    bhn0 = bhn0_ref[...]
    bhn1 = bhn1_ref[...]

    def cell(gi, h, whh, bhn):
        # PyTorch GRU cell, gates packed [r | z | n] along lanes; b_hn kept inside r * (.)
        gh = jnp.dot(h, whh, preferred_element_type=jnp.float32)
        r = jax.nn.sigmoid(gi[:, 0:H] + gh[:, 0:H])
        z = jax.nn.sigmoid(gi[:, H:2 * H] + gh[:, H:2 * H])
        n = jnp.tanh(gi[:, 2 * H:3 * H] + r * (gh[:, 2 * H:3 * H] + bhn))
        return (1.0 - z) * n + z * h

    h0 = jnp.zeros((B, H), jnp.float32)
    h1 = jnp.zeros((B, H), jnp.float32)
    for t in range(SEQ):                                  # static, fully unrolled time loop
        gi0_t = gi0_all[t * B:(t + 1) * B, :]             # static sublane slice
        h0 = cell(gi0_t, h0, whh0, bhn0)
        gi1_t = jnp.dot(h0, wih1, preferred_element_type=jnp.float32) + bi1
        h1 = cell(gi1_t, h1, whh1, bhn1)

    # hidden.view(batch_size, -1):  h_n (2, B, H) row-major -> (B, 2H).
    # Row r of the flat view = [stacked[2r], stacked[2r+1]] with stacked = [h0; h1] (2B, H).
    # Reproduced with even/odd row-selection matmuls (no in-kernel reshape needed); the 2H
    # contraction of Linear1 is split accordingly (W1 = [w1a; w1b]).
    stacked = jnp.concatenate([h0, h1], axis=0)           # (2B, H)
    even = jnp.dot(g0_ref[...], stacked, preferred_element_type=jnp.float32)   # (B, H)
    odd = jnp.dot(g1_ref[...], stacked, preferred_element_type=jnp.float32)    # (B, H)

    y = (jnp.dot(even, w1a_ref[...], preferred_element_type=jnp.float32)
         + jnp.dot(odd, w1b_ref[...], preferred_element_type=jnp.float32)
         + b1_ref[...])                                   # Linear1 + folded BN1
    y = jnp.maximum(y, 0.0)                               # Dropout = identity (eval), ReLU
    y = jnp.dot(y, w2_ref[...], preferred_element_type=jnp.float32) + b2_ref[...]   # Linear2+BN2
    y = jnp.maximum(y, 0.0)
    out_ref[...] = jnp.dot(y, w3_ref[...], preferred_element_type=jnp.float32) + b3_ref[...]


def birnn_pallas(x2d, kp):
    B = BATCH
    return pl.pallas_call(
        birnn_kernel,
        out_shape=jax.ShapeDtypeStruct((B, 2), jnp.float32),
        # No grid: single invocation; all operands are full-array VMEM blocks (default specs).
    )(x2d,
      kp["wih0p"], kp["whh0p"], kp["bi0p"], kp["bhn0"],
      kp["wih1p"], kp["whh1p"], kp["bi1p"], kp["bhn1"],
      kp["g0"], kp["g1"],
      kp["w1a"], kp["w1b"], kp["b1f"],
      kp["w2f"], kp["b2f"],
      kp["w3"], kp["b3"])


# ------------------------------ wrapper ------------------------------------ #
def birnn_forward(x, kernel_params):
    # x: (B, num_in, seq), same as the PyTorch module's NCL input.
    x_tbf = jnp.transpose(x, (2, 0, 1))                   # time-major (T, B, F)
    x2d = x_tbf.reshape(SEQ * BATCH, NUM_IN)              # rows ordered (t, b)
    return birnn_pallas(x2d, kernel_params)               # (B, 2)


# ------------------- raw params, host-side folding, reference ---------------- #
def _uniform(key, shape, scale):
    return jax.random.uniform(key, shape, jnp.float32, -scale, scale)


def init_params(key):
    """Raw PyTorch-like parameters (GRU gates stacked (3, in, H); BN params separate)."""
    H = NUM_HIDDEN
    k_rnn = 1.0 / float(H) ** 0.5
    d1 = SZ + 14                                          # 32
    keys = jax.random.split(key, 14)
    p = {
        "wih0": _uniform(keys[0], (3, NUM_IN, H), k_rnn),
        "whh0": _uniform(keys[1], (3, H, H), k_rnn),
        "bih0": _uniform(keys[2], (3, 1, H), k_rnn),
        "bhh0": _uniform(keys[3], (3, 1, H), k_rnn),
        "wih1": _uniform(keys[4], (3, H, H), k_rnn),
        "whh1": _uniform(keys[5], (3, H, H), k_rnn),
        "bih1": _uniform(keys[6], (3, 1, H), k_rnn),
        "bhh1": _uniform(keys[7], (3, 1, H), k_rnn),
        "w1": _uniform(keys[8], (2 * H, d1), 1.0 / float(2 * H) ** 0.5),
        "b1": _uniform(keys[9], (1, d1), 1.0 / float(2 * H) ** 0.5),
        "g1": jnp.ones((1, d1), jnp.float32), "be1": jnp.zeros((1, d1), jnp.float32),
        "m1": jnp.zeros((1, d1), jnp.float32), "v1": jnp.ones((1, d1), jnp.float32),
        "w2": _uniform(keys[10], (d1, SZ), 1.0 / float(d1) ** 0.5),
        "b2": _uniform(keys[11], (1, SZ), 1.0 / float(d1) ** 0.5),
        "g2": jnp.ones((1, SZ), jnp.float32), "be2": jnp.zeros((1, SZ), jnp.float32),
        "m2": jnp.zeros((1, SZ), jnp.float32), "v2": jnp.ones((1, SZ), jnp.float32),
        "w3": _uniform(keys[12], (SZ, 2), 1.0 / float(SZ) ** 0.5),
        "b3": _uniform(keys[13], (1, 2), 1.0 / float(SZ) ** 0.5),
    }
    return p


def prepare_params(p):
    """One-time host-side packing / folding for the fused kernel."""
    H = NUM_HIDDEN
    B = BATCH

    def pack_w(w3xh):                                     # (3, in, H) -> (in, 3H) as [r|z|n]
        return jnp.concatenate([w3xh[0], w3xh[1], w3xh[2]], axis=1)

    def pack_bi(bih, bhh):                                # pre-sum r/z biases; keep b_in for n
        return jnp.concatenate([bih[0] + bhh[0], bih[1] + bhh[1], bih[2]], axis=1)

    # Even/odd row-selection matrices reproducing h_n.view(batch_size, -1).
    rows = jnp.arange(B)[:, None]
    cols = jnp.arange(2 * B)[None, :]
    g0 = (cols == 2 * rows).astype(jnp.float32)           # (B, 2B)
    g1 = (cols == 2 * rows + 1).astype(jnp.float32)

    # Fold BatchNorm (running stats) into the preceding Linear.
    s1 = p["g1"] * jax.lax.rsqrt(p["v1"] + BN_EPS)        # (1, d1)
    w1f = p["w1"] * s1
    b1f = (p["b1"] - p["m1"]) * s1 + p["be1"]
    s2 = p["g2"] * jax.lax.rsqrt(p["v2"] + BN_EPS)
    w2f = p["w2"] * s2
    b2f = (p["b2"] - p["m2"]) * s2 + p["be2"]

    return {
        "wih0p": pack_w(p["wih0"]), "whh0p": pack_w(p["whh0"]),
        "bi0p": pack_bi(p["bih0"], p["bhh0"]), "bhn0": p["bhh0"][2],
        "wih1p": pack_w(p["wih1"]), "whh1p": pack_w(p["whh1"]),
        "bi1p": pack_bi(p["bih1"], p["bhh1"]), "bhn1": p["bhh1"][2],
        "g0": g0, "g1": g1,
        "w1a": w1f[:H], "w1b": w1f[H:], "b1f": b1f,
        "w2f": w2f, "b2f": b2f,
        "w3": p["w3"], "b3": p["b3"],
    }


def birnn_reference(x, p):
    """Pure-JAX reference with identical semantics (for correctness check)."""
    def cell(x_t, h, w_ih, w_hh, b_ih, b_hh):
        r = jax.nn.sigmoid(x_t @ w_ih[0] + b_ih[0] + h @ w_hh[0] + b_hh[0])
        z = jax.nn.sigmoid(x_t @ w_ih[1] + b_ih[1] + h @ w_hh[1] + b_hh[1])
        n = jnp.tanh(x_t @ w_ih[2] + b_ih[2] + r * (h @ w_hh[2] + b_hh[2]))
        return (1.0 - z) * n + z * h

    xt = jnp.transpose(x, (2, 0, 1))
    B, H = x.shape[0], NUM_HIDDEN
    h0 = jnp.zeros((B, H), jnp.float32)
    h1 = jnp.zeros((B, H), jnp.float32)
    for t in range(xt.shape[0]):
        h0 = cell(xt[t], h0, p["wih0"], p["whh0"], p["bih0"], p["bhh0"])
        h1 = cell(h0, h1, p["wih1"], p["whh1"], p["bih1"], p["bhh1"])
    hflat = jnp.stack([h0, h1], 0).reshape(BATCH, -1)     # replicates hidden.view(batch_size, -1)
    y = hflat @ p["w1"] + p["b1"]
    y = (y - p["m1"]) / jnp.sqrt(p["v1"] + BN_EPS) * p["g1"] + p["be1"]
    y = jnp.maximum(y, 0.0)
    y = y @ p["w2"] + p["b2"]
    y = (y - p["m2"]) / jnp.sqrt(p["v2"] + BN_EPS) * p["g2"] + p["be2"]
    y = jnp.maximum(y, 0.0)
    return y @ p["w3"] + p["b3"]


if __name__ == "__main__":
    key = jax.random.PRNGKey(0)
    kx, kp = jax.random.split(key)
    x = jax.random.normal(kx, (BATCH, NUM_IN, SEQ), dtype=jnp.float32)
    raw = init_params(kp)
    packed = prepare_params(raw)

    out = birnn_forward(x, packed)
    out = jax.block_until_ready(out)
    assert out.shape == (BATCH, 2) and out.dtype == jnp.float32

    ref = birnn_reference(x, raw)
    assert jnp.allclose(out, ref, atol=2e-3, rtol=2e-3), (out, ref)

    print("KERNEL_OK")
</pallas_src>

<mosaic_0001>
module attributes {stable_mosaic.version = 11 : i64} {
  func.func @birnn_kernel(%arg0: memref<64x16xf32, #tpu.memory_space<vmem>>, %arg1: memref<16x96xf32, #tpu.memory_space<vmem>>, %arg2: memref<32x96xf32, #tpu.memory_space<vmem>>, %arg3: memref<1x96xf32, #tpu.memory_space<vmem>>, %arg4: memref<1x32xf32, #tpu.memory_space<vmem>>, %arg5: memref<32x96xf32, #tpu.memory_space<vmem>>, %arg6: memref<32x96xf32, #tpu.memory_space<vmem>>, %arg7: memref<1x96xf32, #tpu.memory_space<vmem>>, %arg8: memref<1x32xf32, #tpu.memory_space<vmem>>, %arg9: memref<8x16xf32, #tpu.memory_space<vmem>>, %arg10: memref<8x16xf32, #tpu.memory_space<vmem>>, %arg11: memref<32x32xf32, #tpu.memory_space<vmem>>, %arg12: memref<32x32xf32, #tpu.memory_space<vmem>>, %arg13: memref<1x32xf32, #tpu.memory_space<vmem>>, %arg14: memref<32x18xf32, #tpu.memory_space<vmem>>, %arg15: memref<1x18xf32, #tpu.memory_space<vmem>>, %arg16: memref<18x2xf32, #tpu.memory_space<vmem>>, %arg17: memref<1x2xf32, #tpu.memory_space<vmem>>, %arg18: memref<8x2xf32, #tpu.memory_space<vmem>>) attributes {dimension_semantics = [], scalar_prefetch = 0 : i64, scratch_operands = 0 : i64, tpu.core_type = #tpu.core_type<tc>} {
    %c0 = arith.constant 0 : index
    %c0_0 = arith.constant 0 : index
    %0 = vector.load %arg0[%c0, %c0_0] : memref<64x16xf32, #tpu.memory_space<vmem>>, vector<64x16xf32>
    %c0_1 = arith.constant 0 : index
    %c0_2 = arith.constant 0 : index
    %1 = vector.load %arg1[%c0_1, %c0_2] : memref<16x96xf32, #tpu.memory_space<vmem>>, vector<16x96xf32>
    %cst = arith.constant dense<0.000000e+00> : vector<64x96xf32>
    %2 = tpu.matmul %0, %1, %cst {dimension_numbers = #tpu.dot_dimension_numbers<[1], [0], [0], [1], [0, 0, 1, 1], [], []>} : vector<64x16xf32>, vector<16x96xf32>, vector<64x96xf32> -> vector<64x96xf32>
    %c0_3 = arith.constant 0 : index
    %c0_4 = arith.constant 0 : index
    %3 = vector.load %arg3[%c0_3, %c0_4] : memref<1x96xf32, #tpu.memory_space<vmem>>, vector<1x96xf32>
    %4 = vector.broadcast %3 : vector<1x96xf32> to vector<64x96xf32>
    %5 = arith.addf %2, %4 : vector<64x96xf32>
    %c0_5 = arith.constant 0 : index
    %c0_6 = arith.constant 0 : index
    %6 = vector.load %arg2[%c0_5, %c0_6] : memref<32x96xf32, #tpu.memory_space<vmem>>, vector<32x96xf32>
    %c0_7 = arith.constant 0 : index
    %c0_8 = arith.constant 0 : index
    %7 = vector.load %arg5[%c0_7, %c0_8] : memref<32x96xf32, #tpu.memory_space<vmem>>, vector<32x96xf32>
    %c0_9 = arith.constant 0 : index
    %c0_10 = arith.constant 0 : index
    %8 = vector.load %arg6[%c0_9, %c0_10] : memref<32x96xf32, #tpu.memory_space<vmem>>, vector<32x96xf32>
    %c0_11 = arith.constant 0 : index
    %c0_12 = arith.constant 0 : index
    %9 = vector.load %arg7[%c0_11, %c0_12] : memref<1x96xf32, #tpu.memory_space<vmem>>, vector<1x96xf32>
    %c0_13 = arith.constant 0 : index
    %c0_14 = arith.constant 0 : index
    %10 = vector.load %arg4[%c0_13, %c0_14] : memref<1x32xf32, #tpu.memory_space<vmem>>, vector<1x32xf32>
    %c0_15 = arith.constant 0 : index
    %c0_16 = arith.constant 0 : index
    %11 = vector.load %arg8[%c0_15, %c0_16] : memref<1x32xf32, #tpu.memory_space<vmem>>, vector<1x32xf32>
    %cst_17 = arith.constant 0.000000e+00 : f32
    %12 = vector.broadcast %cst_17 : f32 to vector<8x32xf32>
    %cst_18 = arith.constant 0.000000e+00 : f32
    %13 = vector.broadcast %cst_18 : f32 to vector<8x32xf32>
    %14 = vector.extract_strided_slice %5 {offsets = [0, 0], sizes = [8, 96], strides = [1, 1]} : vector<64x96xf32> to vector<8x96xf32>
    %cst_19 = arith.constant dense<0.000000e+00> : vector<8x96xf32>
    %15 = tpu.matmul %12, %6, %cst_19 {dimension_numbers = #tpu.dot_dimension_numbers<[1], [0], [0], [1], [0, 0, 1, 1], [], []>} : vector<8x32xf32>, vector<32x96xf32>, vector<8x96xf32> -> vector<8x96xf32>
    %16 = vector.extract_strided_slice %14 {offsets = [0, 0], sizes = [8, 32], strides = [1, 1]} : vector<8x96xf32> to vector<8x32xf32>
    %17 = vector.extract_strided_slice %15 {offsets = [0, 0], sizes = [8, 32], strides = [1, 1]} : vector<8x96xf32> to vector<8x32xf32>
    %18 = arith.addf %16, %17 : vector<8x32xf32>
    %19 = arith.negf %18 : vector<8x32xf32>
    %20 = math.exp %19 : vector<8x32xf32>
    %cst_20 = arith.constant 1.000000e+00 : f32
    %21 = vector.broadcast %cst_20 : f32 to vector<8x32xf32>
    %22 = arith.addf %21, %20 : vector<8x32xf32>
    %23 = arith.divf %21, %22 : vector<8x32xf32>
    %24 = vector.extract_strided_slice %14 {offsets = [0, 32], sizes = [8, 32], strides = [1, 1]} : vector<8x96xf32> to vector<8x32xf32>
    %25 = vector.extract_strided_slice %15 {offsets = [0, 32], sizes = [8, 32], strides = [1, 1]} : vector<8x96xf32> to vector<8x32xf32>
    %26 = arith.addf %24, %25 : vector<8x32xf32>
    %27 = arith.negf %26 : vector<8x32xf32>
    %28 = math.exp %27 : vector<8x32xf32>
    %cst_21 = arith.constant 1.000000e+00 : f32
    %29 = vector.broadcast %cst_21 : f32 to vector<8x32xf32>
    %30 = arith.addf %29, %28 : vector<8x32xf32>
    %31 = arith.divf %29, %30 : vector<8x32xf32>
    %32 = vector.extract_strided_slice %14 {offsets = [0, 64], sizes = [8, 32], strides = [1, 1]} : vector<8x96xf32> to vector<8x32xf32>
    %33 = vector.extract_strided_slice %15 {offsets = [0, 64], sizes = [8, 32], strides = [1, 1]} : vector<8x96xf32> to vector<8x32xf32>
    %34 = vector.broadcast %10 : vector<1x32xf32> to vector<8x32xf32>
    %35 = arith.addf %33, %34 : vector<8x32xf32>
    %36 = arith.mulf %23, %35 : vector<8x32xf32>
    %37 = arith.addf %32, %36 : vector<8x32xf32>
    %38 = math.tanh %37 : vector<8x32xf32>
    %cst_22 = arith.constant 1.000000e+00 : f32
    %39 = vector.broadcast %cst_22 : f32 to vector<8x32xf32>
    %40 = arith.subf %39, %31 : vector<8x32xf32>
    %41 = arith.mulf %40, %38 : vector<8x32xf32>
    %42 = arith.mulf %31, %12 : vector<8x32xf32>
    %43 = arith.addf %41, %42 : vector<8x32xf32>
    %cst_23 = arith.constant dense<0.000000e+00> : vector<8x96xf32>
    %44 = tpu.matmul %43, %7, %cst_23 {dimension_numbers = #tpu.dot_dimension_numbers<[1], [0], [0], [1], [0, 0, 1, 1], [], []>} : vector<8x32xf32>, vector<32x96xf32>, vector<8x96xf32> -> vector<8x96xf32>
    %45 = vector.broadcast %9 : vector<1x96xf32> to vector<8x96xf32>
    %46 = arith.addf %44, %45 : vector<8x96xf32>
    %cst_24 = arith.constant dense<0.000000e+00> : vector<8x96xf32>
    %47 = tpu.matmul %13, %8, %cst_24 {dimension_numbers = #tpu.dot_dimension_numbers<[1], [0], [0], [1], [0, 0, 1, 1], [], []>} : vector<8x32xf32>, vector<32x96xf32>, vector<8x96xf32> -> vector<8x96xf32>
    %48 = vector.extract_strided_slice %46 {offsets = [0, 0], sizes = [8, 32], strides = [1, 1]} : vector<8x96xf32> to vector<8x32xf32>
    %49 = vector.extract_strided_slice %47 {offsets = [0, 0], sizes = [8, 32], strides = [1, 1]} : vector<8x96xf32> to vector<8x32xf32>
    %50 = arith.addf %48, %49 : vector<8x32xf32>
    %51 = arith.negf %50 : vector<8x32xf32>
    %52 = math.exp %51 : vector<8x32xf32>
    %cst_25 = arith.constant 1.000000e+00 : f32
    %53 = vector.broadcast %cst_25 : f32 to vector<8x32xf32>
    %54 = arith.addf %53, %52 : vector<8x32xf32>
    %55 = arith.divf %53, %54 : vector<8x32xf32>
    %56 = vector.extract_strided_slice %46 {offsets = [0, 32], sizes = [8, 32], strides = [1, 1]} : vector<8x96xf32> to vector<8x32xf32>
    %57 = vector.extract_strided_slice %47 {offsets = [0, 32], sizes = [8, 32], strides = [1, 1]} : vector<8x96xf32> to vector<8x32xf32>
    %58 = arith.addf %56, %57 : vector<8x32xf32>
    %59 = arith.negf %58 : vector<8x32xf32>
    %60 = math.exp %59 : vector<8x32xf32>
    %cst_26 = arith.constant 1.000000e+00 : f32
    %61 = vector.broadcast %cst_26 : f32 to vector<8x32xf32>
    %62 = arith.addf %61, %60 : vector<8x32xf32>
    %63 = arith.divf %61, %62 : vector<8x32xf32>
    %64 = vector.extract_strided_slice %46 {offsets = [0, 64], sizes = [8, 32], strides = [1, 1]} : vector<8x96xf32> to vector<8x32xf32>
    %65 = vector.extract_strided_slice %47 {offsets = [0, 64], sizes = [8, 32], strides = [1, 1]} : vector<8x96xf32> to vector<8x32xf32>
    %66 = vector.broadcast %11 : vector<1x32xf32> to vector<8x32xf32>
    %67 = arith.addf %65, %66 : vector<8x32xf32>
    %68 = arith.mulf %55, %67 : vector<8x32xf32>
    %69 = arith.addf %64, %68 : vector<8x32xf32>
    %70 = math.tanh %69 : vector<8x32xf32>
    %cst_27 = arith.constant 1.000000e+00 : f32
    %71 = vector.broadcast %cst_27 : f32 to vector<8x32xf32>
    %72 = arith.subf %71, %63 : vector<8x32xf32>
    %73 = arith.mulf %72, %70 : vector<8x32xf32>
    %74 = arith.mulf %63, %13 : vector<8x32xf32>
    %75 = arith.addf %73, %74 : vector<8x32xf32>
    %76 = vector.extract_strided_slice %5 {offsets = [8, 0], sizes = [8, 96], strides = [1, 1]} : vector<64x96xf32> to vector<8x96xf32>
    %cst_28 = arith.constant dense<0.000000e+00> : vector<8x96xf32>
    %77 = tpu.matmul %43, %6, %cst_28 {dimension_numbers = #tpu.dot_dimension_numbers<[1], [0], [0], [1], [0, 0, 1, 1], [], []>} : vector<8x32xf32>, vector<32x96xf32>, vector<8x96xf32> -> vector<8x96xf32>
    %78 = vector.extract_strided_slice %76 {offsets = [0, 0], sizes = [8, 32], strides = [1, 1]} : vector<8x96xf32> to vector<8x32xf32>
    %79 = vector.extract_strided_slice %77 {offsets = [0, 0], sizes = [8, 32], strides = [1, 1]} : vector<8x96xf32> to vector<8x32xf32>
    %80 = arith.addf %78, %79 : vector<8x32xf32>
    %81 = arith.negf %80 : vector<8x32xf32>
    %82 = math.exp %81 : vector<8x32xf32>
    %cst_29 = arith.constant 1.000000e+00 : f32
    %83 = vector.broadcast %cst_29 : f32 to vector<8x32xf32>
    %84 = arith.addf %83, %82 : vector<8x32xf32>
    %85 = arith.divf %83, %84 : vector<8x32xf32>
    %86 = vector.extract_strided_slice %76 {offsets = [0, 32], sizes = [8, 32], strides = [1, 1]} : vector<8x96xf32> to vector<8x32xf32>
    %87 = vector.extract_strided_slice %77 {offsets = [0, 32], sizes = [8, 32], strides = [1, 1]} : vector<8x96xf32> to vector<8x32xf32>
    %88 = arith.addf %86, %87 : vector<8x32xf32>
    %89 = arith.negf %88 : vector<8x32xf32>
    %90 = math.exp %89 : vector<8x32xf32>
    %cst_30 = arith.constant 1.000000e+00 : f32
    %91 = vector.broadcast %cst_30 : f32 to vector<8x32xf32>
    %92 = arith.addf %91, %90 : vector<8x32xf32>
    %93 = arith.divf %91, %92 : vector<8x32xf32>
    %94 = vector.extract_strided_slice %76 {offsets = [0, 64], sizes = [8, 32], strides = [1, 1]} : vector<8x96xf32> to vector<8x32xf32>
    %95 = vector.extract_strided_slice %77 {offsets = [0, 64], sizes = [8, 32], strides = [1, 1]} : vector<8x96xf32> to vector<8x32xf32>
    %96 = vector.broadcast %10 : vector<1x32xf32> to vector<8x32xf32>
    %97 = arith.addf %95, %96 : vector<8x32xf32>
    %98 = arith.mulf %85, %97 : vector<8x32xf32>
    %99 = arith.addf %94, %98 : vector<8x32xf32>
    %100 = math.tanh %99 : vector<8x32xf32>
    %cst_31 = arith.constant 1.000000e+00 : f32
    %101 = vector.broadcast %cst_31 : f32 to vector<8x32xf32>
    %102 = arith.subf %101, %93 : vector<8x32xf32>
    %103 = arith.mulf %102, %100 : vector<8x32xf32>
    %104 = arith.mulf %93, %43 : vector<8x32xf32>
    %105 = arith.addf %103, %104 : vector<8x32xf32>
    %cst_32 = arith.constant dense<0.000000e+00> : vector<8x96xf32>
    %106 = tpu.matmul %105, %7, %cst_32 {dimension_numbers = #tpu.dot_dimension_numbers<[1], [0], [0], [1], [0, 0, 1, 1], [], []>} : vector<8x32xf32>, vector<32x96xf32>, vector<8x96xf32> -> vector<8x96xf32>
    %107 = vector.broadcast %9 : vector<1x96xf32> to vector<8x96xf32>
    %108 = arith.addf %106, %107 : vector<8x96xf32>
    %cst_33 = arith.constant dense<0.000000e+00> : vector<8x96xf32>
    %109 = tpu.matmul %75, %8, %cst_33 {dimension_numbers = #tpu.dot_dimension_numbers<[1], [0], [0], [1], [0, 0, 1, 1], [], []>} : vector<8x32xf32>, vector<32x96xf32>, vector<8x96xf32> -> vector<8x96xf32>
    %110 = vector.extract_strided_slice %108 {offsets = [0, 0], sizes = [8, 32], strides = [1, 1]} : vector<8x96xf32> to vector<8x32xf32>
    %111 = vector.extract_strided_slice %109 {offsets = [0, 0], sizes = [8, 32], strides = [1, 1]} : vector<8x96xf32> to vector<8x32xf32>
    %112 = arith.addf %110, %111 : vector<8x32xf32>
    %113 = arith.negf %112 : vector<8x32xf32>
    %114 = math.exp %113 : vector<8x32xf32>
    %cst_34 = arith.constant 1.000000e+00 : f32
    %115 = vector.broadcast %cst_34 : f32 to vector<8x32xf32>
    %116 = arith.addf %115, %114 : vector<8x32xf32>
    %117 = arith.divf %115, %116 : vector<8x32xf32>
    %118 = vector.extract_strided_slice %108 {offsets = [0, 32], sizes = [8, 32], strides = [1, 1]} : vector<8x96xf32> to vector<8x32xf32>
    %119 = vector.extract_strided_slice %109 {offsets = [0, 32], sizes = [8, 32], strides = [1, 1]} : vector<8x96xf32> to vector<8x32xf32>
    %120 = arith.addf %118, %119 : vector<8x32xf32>
    %121 = arith.negf %120 : vector<8x32xf32>
    %122 = math.exp %121 : vector<8x32xf32>
    %cst_35 = arith.constant 1.000000e+00 : f32
    %123 = vector.broadcast %cst_35 : f32 to vector<8x32xf32>
    %124 = arith.addf %123, %122 : vector<8x32xf32>
    %125 = arith.divf %123, %124 : vector<8x32xf32>
    %126 = vector.extract_strided_slice %108 {offsets = [0, 64], sizes = [8, 32], strides = [1, 1]} : vector<8x96xf32> to vector<8x32xf32>
    %127 = vector.extract_strided_slice %109 {offsets = [0, 64], sizes = [8, 32], strides = [1, 1]} : vector<8x96xf32> to vector<8x32xf32>
    %128 = vector.broadcast %11 : vector<1x32xf32> to vector<8x32xf32>
    %129 = arith.addf %127, %128 : vector<8x32xf32>
    %130 = arith.mulf %117, %129 : vector<8x32xf32>
    %131 = arith.addf %126, %130 : vector<8x32xf32>
    %132 = math.tanh %131 : vector<8x32xf32>
    %cst_36 = arith.constant 1.000000e+00 : f32
    %133 = vector.broadcast %cst_36 : f32 to vector<8x32xf32>
    %134 = arith.subf %133, %125 : vector<8x32xf32>
    %135 = arith.mulf %134, %132 : vector<8x32xf32>
    %136 = arith.mulf %125, %75 : vector<8x32xf32>
    %137 = arith.addf %135, %136 : vector<8x32xf32>
    %138 = vector.extract_strided_slice %5 {offsets = [16, 0], sizes = [8, 96], strides = [1, 1]} : vector<64x96xf32> to vector<8x96xf32>
    %cst_37 = arith.constant dense<0.000000e+00> : vector<8x96xf32>
    %139 = tpu.matmul %105, %6, %cst_37 {dimension_numbers = #tpu.dot_dimension_numbers<[1], [0], [0], [1], [0, 0, 1, 1], [], []>} : vector<8x32xf32>, vector<32x96xf32>, vector<8x96xf32> -> vector<8x96xf32>
    %140 = vector.extract_strided_slice %138 {offsets = [0, 0], sizes = [8, 32], strides = [1, 1]} : vector<8x96xf32> to vector<8x32xf32>
    %141 = vector.extract_strided_slice %139 {offsets = [0, 0], sizes = [8, 32], strides = [1, 1]} : vector<8x96xf32> to vector<8x32xf32>
    %142 = arith.addf %140, %141 : vector<8x32xf32>
    %143 = arith.negf %142 : vector<8x32xf32>
    %144 = math.exp %143 : vector<8x32xf32>
    %cst_38 = arith.constant 1.000000e+00 : f32
    %145 = vector.broadcast %cst_38 : f32 to vector<8x32xf32>
    %146 = arith.addf %145, %144 : vector<8x32xf32>
    %147 = arith.divf %145, %146 : vector<8x32xf32>
    %148 = vector.extract_strided_slice %138 {offsets = [0, 32], sizes = [8, 32], strides = [1, 1]} : vector<8x96xf32> to vector<8x32xf32>
    %149 = vector.extract_strided_slice %139 {offsets = [0, 32], sizes = [8, 32], strides = [1, 1]} : vector<8x96xf32> to vector<8x32xf32>
    %150 = arith.addf %148, %149 : vector<8x32xf32>
    %151 = arith.negf %150 : vector<8x32xf32>
    %152 = math.exp %151 : vector<8x32xf32>
    %cst_39 = arith.constant 1.000000e+00 : f32
    %153 = vector.broadcast %cst_39 : f32 to vector<8x32xf32>
    %154 = arith.addf %153, %152 : vector<8x32xf32>
    %155 = arith.divf %153, %154 : vector<8x32xf32>
    %156 = vector.extract_strided_slice %138 {offsets = [0, 64], sizes = [8, 32], strides = [1, 1]} : vector<8x96xf32> to vector<8x32xf32>
    %157 = vector.extract_strided_slice %139 {offsets = [0, 64], sizes = [8, 32], strides = [1, 1]} : vector<8x96xf32> to vector<8x32xf32>
    %158 = vector.broadcast %10 : vector<1x32xf32> to vector<8x32xf32>
    %159 = arith.addf %157, %158 : vector<8x32xf32>
    %160 = arith.mulf %147, %159 : vector<8x32xf32>
    %161 = arith.addf %156, %160 : vector<8x32xf32>
    %162 = math.tanh %161 : vector<8x32xf32>
    %cst_40 = arith.constant 1.000000e+00 : f32
    %163 = vector.broadcast %cst_40 : f32 to vector<8x32xf32>
    %164 = arith.subf %163, %155 : vector<8x32xf32>
    %165 = arith.mulf %164, %162 : vector<8x32xf32>
    %166 = arith.mulf %155, %105 : vector<8x32xf32>
    %167 = arith.addf %165, %166 : vector<8x32xf32>
    %cst_41 = arith.constant dense<0.000000e+00> : vector<8x96xf32>
    %168 = tpu.matmul %167, %7, %cst_41 {dimension_numbers = #tpu.dot_dimension_numbers<[1], [0], [0], [1], [0, 0, 1, 1], [], []>} : vector<8x32xf32>, vector<32x96xf32>, vector<8x96xf32> -> vector<8x96xf32>
    %169 = vector.broadcast %9 : vector<1x96xf32> to vector<8x96xf32>
    %170 = arith.addf %168, %169 : vector<8x96xf32>
    %cst_42 = arith.constant dense<0.000000e+00> : vector<8x96xf32>
    %171 = tpu.matmul %137, %8, %cst_42 {dimension_numbers = #tpu.dot_dimension_numbers<[1], [0], [0], [1], [0, 0, 1, 1], [], []>} : vector<8x32xf32>, vector<32x96xf32>, vector<8x96xf32> -> vector<8x96xf32>
    %172 = vector.extract_strided_slice %170 {offsets = [0, 0], sizes = [8, 32], strides = [1, 1]} : vector<8x96xf32> to vector<8x32xf32>
    %173 = vector.extract_strided_slice %171 {offsets = [0, 0], sizes = [8, 32], strides = [1, 1]} : vector<8x96xf32> to vector<8x32xf32>
    %174 = arith.addf %172, %173 : vector<8x32xf32>
    %175 = arith.negf %174 : vector<8x32xf32>
    %176 = math.exp %175 : vector<8x32xf32>
    %cst_43 = arith.constant 1.000000e+00 : f32
    %177 = vector.broadcast %cst_43 : f32 to vector<8x32xf32>
    %178 = arith.addf %177, %176 : vector<8x32xf32>
    %179 = arith.divf %177, %178 : vector<8x32xf32>
    %180 = vector.extract_strided_slice %170 {offsets = [0, 32], sizes = [8, 32], strides = [1, 1]} : vector<8x96xf32> to vector<8x32xf32>
    %181 = vector.extract_strided_slice %171 {offsets = [0, 32], sizes = [8, 32], strides = [1, 1]} : vector<8x96xf32> to vector<8x32xf32>
    %182 = arith.addf %180, %181 : vector<8x32xf32>
    %183 = arith.negf %182 : vector<8x32xf32>
    %184 = math.exp %183 : vector<8x32xf32>
    %cst_44 = arith.constant 1.000000e+00 : f32
    %185 = vector.broadcast %cst_44 : f32 to vector<8x32xf32>
    %186 = arith.addf %185, %184 : vector<8x32xf32>
    %187 = arith.divf %185, %186 : vector<8x32xf32>
    %188 = vector.extract_strided_slice %170 {offsets = [0, 64], sizes = [8, 32], strides = [1, 1]} : vector<8x96xf32> to vector<8x32xf32>
    %189 = vector.extract_strided_slice %171 {offsets = [0, 64], sizes = [8, 32], strides = [1, 1]} : vector<8x96xf32> to vector<8x32xf32>
    %190 = vector.broadcast %11 : vector<1x32xf32> to vector<8x32xf32>
    %191 = arith.addf %189, %190 : vector<8x32xf32>
    %192 = arith.mulf %179, %191 : vector<8x32xf32>
    %193 = arith.addf %188, %192 : vector<8x32xf32>
    %194 = math.tanh %193 : vector<8x32xf32>
    %cst_45 = arith.constant 1.000000e+00 : f32
    %195 = vector.broadcast %cst_45 : f32 to vector<8x32xf32>
    %196 = arith.subf %195, %187 : vector<8x32xf32>
    %197 = arith.mulf %196, %194 : vector<8x32xf32>
    %198 = arith.mulf %187, %137 : vector<8x32xf32>
    %199 = arith.addf %197, %198 : vector<8x32xf32>
    %200 = vector.extract_strided_slice %5 {offsets = [24, 0], sizes = [8, 96], strides = [1, 1]} : vector<64x96xf32> to vector<8x96xf32>
    %cst_46 = arith.constant dense<0.000000e+00> : vector<8x96xf32>
    %201 = tpu.matmul %167, %6, %cst_46 {dimension_numbers = #tpu.dot_dimension_numbers<[1], [0], [0], [1], [0, 0, 1, 1], [], []>} : vector<8x32xf32>, vector<32x96xf32>, vector<8x96xf32> -> vector<8x96xf32>
    %202 = vector.extract_strided_slice %200 {offsets = [0, 0], sizes = [8, 32], strides = [1, 1]} : vector<8x96xf32> to vector<8x32xf32>
    %203 = vector.extract_strided_slice %201 {offsets = [0, 0], sizes = [8, 32], strides = [1, 1]} : vector<8x96xf32> to vector<8x32xf32>
    %204 = arith.addf %202, %203 : vector<8x32xf32>
    %205 = arith.negf %204 : vector<8x32xf32>
    %206 = math.exp %205 : vector<8x32xf32>
    %cst_47 = arith.constant 1.000000e+00 : f32
    %207 = vector.broadcast %cst_47 : f32 to vector<8x32xf32>
    %208 = arith.addf %207, %206 : vector<8x32xf32>
    %209 = arith.divf %207, %208 : vector<8x32xf32>
    %210 = vector.extract_strided_slice %200 {offsets = [0, 32], sizes = [8, 32], strides = [1, 1]} : vector<8x96xf32> to vector<8x32xf32>
    %211 = vector.extract_strided_slice %201 {offsets = [0, 32], sizes = [8, 32], strides = [1, 1]} : vector<8x96xf32> to vector<8x32xf32>
    %212 = arith.addf %210, %211 : vector<8x32xf32>
    %213 = arith.negf %212 : vector<8x32xf32>
    %214 = math.exp %213 : vector<8x32xf32>
    %cst_48 = arith.constant 1.000000e+00 : f32
    %215 = vector.broadcast %cst_48 : f32 to vector<8x32xf32>
    %216 = arith.addf %215, %214 : vector<8x32xf32>
    %217 = arith.divf %215, %216 : vector<8x32xf32>
    %218 = vector.extract_strided_slice %200 {offsets = [0, 64], sizes = [8, 32], strides = [1, 1]} : vector<8x96xf32> to vector<8x32xf32>
    %219 = vector.extract_strided_slice %201 {offsets = [0, 64], sizes = [8, 32], strides = [1, 1]} : vector<8x96xf32> to vector<8x32xf32>
    %220 = vector.broadcast %10 : vector<1x32xf32> to vector<8x32xf32>
    %221 = arith.addf %219, %220 : vector<8x32xf32>
    %222 = arith.mulf %209, %221 : vector<8x32xf32>
    %223 = arith.addf %218, %222 : vector<8x32xf32>
    %224 = math.tanh %223 : vector<8x32xf32>
    %cst_49 = arith.constant 1.000000e+00 : f32
    %225 = vector.broadcast %cst_49 : f32 to vector<8x32xf32>
    %226 = arith.subf %225, %217 : vector<8x32xf32>
    %227 = arith.mulf %226, %224 : vector<8x32xf32>
    %228 = arith.mulf %217, %167 : vector<8x32xf32>
    %229 = arith.addf %227, %228 : vector<8x32xf32>
    %cst_50 = arith.constant dense<0.000000e+00> : vector<8x96xf32>
    %230 = tpu.matmul %229, %7, %cst_50 {dimension_numbers = #tpu.dot_dimension_numbers<[1], [0], [0], [1], [0, 0, 1, 1], [], []>} : vector<8x32xf32>, vector<32x96xf32>, vector<8x96xf32> -> vector<8x96xf32>
    %231 = vector.broadcast %9 : vector<1x96xf32> to vector<8x96xf32>
    %232 = arith.addf %230, %231 : vector<8x96xf32>
    %cst_51 = arith.constant dense<0.000000e+00> : vector<8x96xf32>
    %233 = tpu.matmul %199, %8, %cst_51 {dimension_numbers = #tpu.dot_dimension_numbers<[1], [0], [0], [1], [0, 0, 1, 1], [], []>} : vector<8x32xf32>, vector<32x96xf32>, vector<8x96xf32> -> vector<8x96xf32>
    %234 = vector.extract_strided_slice %232 {offsets = [0, 0], sizes = [8, 32], strides = [1, 1]} : vector<8x96xf32> to vector<8x32xf32>
    %235 = vector.extract_strided_slice %233 {offsets = [0, 0], sizes = [8, 32], strides = [1, 1]} : vector<8x96xf32> to vector<8x32xf32>
    %236 = arith.addf %234, %235 : vector<8x32xf32>
    %237 = arith.negf %236 : vector<8x32xf32>
    %238 = math.exp %237 : vector<8x32xf32>
    %cst_52 = arith.constant 1.000000e+00 : f32
    %239 = vector.broadcast %cst_52 : f32 to vector<8x32xf32>
    %240 = arith.addf %239, %238 : vector<8x32xf32>
    %241 = arith.divf %239, %240 : vector<8x32xf32>
    %242 = vector.extract_strided_slice %232 {offsets = [0, 32], sizes = [8, 32], strides = [1, 1]} : vector<8x96xf32> to vector<8x32xf32>
    %243 = vector.extract_strided_slice %233 {offsets = [0, 32], sizes = [8, 32], strides = [1, 1]} : vector<8x96xf32> to vector<8x32xf32>
    %244 = arith.addf %242, %243 : vector<8x32xf32>
    %245 = arith.negf %244 : vector<8x32xf32>
    %246 = math.exp %245 : vector<8x32xf32>
    %cst_53 = arith.constant 1.000000e+00 : f32
    %247 = vector.broadcast %cst_53 : f32 to vector<8x32xf32>
    %248 = arith.addf %247, %246 : vector<8x32xf32>
    %249 = arith.divf %247, %248 : vector<8x32xf32>
    %250 = vector.extract_strided_slice %232 {offsets = [0, 64], sizes = [8, 32], strides = [1, 1]} : vector<8x96xf32> to vector<8x32xf32>
    %251 = vector.extract_strided_slice %233 {offsets = [0, 64], sizes = [8, 32], strides = [1, 1]} : vector<8x96xf32> to vector<8x32xf32>
    %252 = vector.broadcast %11 : vector<1x32xf32> to vector<8x32xf32>
    %253 = arith.addf %251, %252 : vector<8x32xf32>
    %254 = arith.mulf %241, %253 : vector<8x32xf32>
    %255 = arith.addf %250, %254 : vector<8x32xf32>
    %256 = math.tanh %255 : vector<8x32xf32>
    %cst_54 = arith.constant 1.000000e+00 : f32
    %257 = vector.broadcast %cst_54 : f32 to vector<8x32xf32>
    %258 = arith.subf %257, %249 : vector<8x32xf32>
    %259 = arith.mulf %258, %256 : vector<8x32xf32>
    %260 = arith.mulf %249, %199 : vector<8x32xf32>
    %261 = arith.addf %259, %260 : vector<8x32xf32>
    %262 = vector.extract_strided_slice %5 {offsets = [32, 0], sizes = [8, 96], strides = [1, 1]} : vector<64x96xf32> to vector<8x96xf32>
    %cst_55 = arith.constant dense<0.000000e+00> : vector<8x96xf32>
    %263 = tpu.matmul %229, %6, %cst_55 {dimension_numbers = #tpu.dot_dimension_numbers<[1], [0], [0], [1], [0, 0, 1, 1], [], []>} : vector<8x32xf32>, vector<32x96xf32>, vector<8x96xf32> -> vector<8x96xf32>
    %264 = vector.extract_strided_slice %262 {offsets = [0, 0], sizes = [8, 32], strides = [1, 1]} : vector<8x96xf32> to vector<8x32xf32>
    %265 = vector.extract_strided_slice %263 {offsets = [0, 0], sizes = [8, 32], strides = [1, 1]} : vector<8x96xf32> to vector<8x32xf32>
    %266 = arith.addf %264, %265 : vector<8x32xf32>
    %267 = arith.negf %266 : vector<8x32xf32>
    %268 = math.exp %267 : vector<8x32xf32>
    %cst_56 = arith.constant 1.000000e+00 : f32
    %269 = vector.broadcast %cst_56 : f32 to vector<8x32xf32>
    %270 = arith.addf %269, %268 : vector<8x32xf32>
    %271 = arith.divf %269, %270 : vector<8x32xf32>
    %272 = vector.extract_strided_slice %262 {offsets = [0, 32], sizes = [8, 32], strides = [1, 1]} : vector<8x96xf32> to vector<8x32xf32>
    %273 = vector.extract_strided_slice %263 {offsets = [0, 32], sizes = [8, 32], strides = [1, 1]} : vector<8x96xf32> to vector<8x32xf32>
    %274 = arith.addf %272, %273 : vector<8x32xf32>
    %275 = arith.negf %274 : vector<8x32xf32>
    %276 = math.exp %275 : vector<8x32xf32>
    %cst_57 = arith.constant 1.000000e+00 : f32
    %277 = vector.broadcast %cst_57 : f32 to vector<8x32xf32>
    %278 = arith.addf %277, %276 : vector<8x32xf32>
    %279 = arith.divf %277, %278 : vector<8x32xf32>
    %280 = vector.extract_strided_slice %262 {offsets = [0, 64], sizes = [8, 32], strides = [1, 1]} : vector<8x96xf32> to vector<8x32xf32>
    %281 = vector.extract_strided_slice %263 {offsets = [0, 64], sizes = [8, 32], strides = [1, 1]} : vector<8x96xf32> to vector<8x32xf32>
    %282 = vector.broadcast %10 : vector<1x32xf32> to vector<8x32xf32>
    %283 = arith.addf %281, %282 : vector<8x32xf32>
    %284 = arith.mulf %271, %283 : vector<8x32xf32>
    %285 = arith.addf %280, %284 : vector<8x32xf32>
    %286 = math.tanh %285 : vector<8x32xf32>
    %cst_58 = arith.constant 1.000000e+00 : f32
    %287 = vector.broadcast %cst_58 : f32 to vector<8x32xf32>
    %288 = arith.subf %287, %279 : vector<8x32xf32>
    %289 = arith.mulf %288, %286 : vector<8x32xf32>
    %290 = arith.mulf %279, %229 : vector<8x32xf32>
    %291 = arith.addf %289, %290 : vector<8x32xf32>
    %cst_59 = arith.constant dense<0.000000e+00> : vector<8x96xf32>
    %292 = tpu.matmul %291, %7, %cst_59 {dimension_numbers = #tpu.dot_dimension_numbers<[1], [0], [0], [1], [0, 0, 1, 1], [], []>} : vector<8x32xf32>, vector<32x96xf32>, vector<8x96xf32> -> vector<8x96xf32>
    %293 = vector.broadcast %9 : vector<1x96xf32> to vector<8x96xf32>
    %294 = arith.addf %292, %293 : vector<8x96xf32>
    %cst_60 = arith.constant dense<0.000000e+00> : vector<8x96xf32>
    %295 = tpu.matmul %261, %8, %cst_60 {dimension_numbers = #tpu.dot_dimension_numbers<[1], [0], [0], [1], [0, 0, 1, 1], [], []>} : vector<8x32xf32>, vector<32x96xf32>, vector<8x96xf32> -> vector<8x96xf32>
    %296 = vector.extract_strided_slice %294 {offsets = [0, 0], sizes = [8, 32], strides = [1, 1]} : vector<8x96xf32> to vector<8x32xf32>
    %297 = vector.extract_strided_slice %295 {offsets = [0, 0], sizes = [8, 32], strides = [1, 1]} : vector<8x96xf32> to vector<8x32xf32>
    %298 = arith.addf %296, %297 : vector<8x32xf32>
    %299 = arith.negf %298 : vector<8x32xf32>
    %300 = math.exp %299 : vector<8x32xf32>
    %cst_61 = arith.constant 1.000000e+00 : f32
    %301 = vector.broadcast %cst_61 : f32 to vector<8x32xf32>
    %302 = arith.addf %301, %300 : vector<8x32xf32>
    %303 = arith.divf %301, %302 : vector<8x32xf32>
    %304 = vector.extract_strided_slice %294 {offsets = [0, 32], sizes = [8, 32], strides = [1, 1]} : vector<8x96xf32> to vector<8x32xf32>
    %305 = vector.extract_strided_slice %295 {offsets = [0, 32], sizes = [8, 32], strides = [1, 1]} : vector<8x96xf32> to vector<8x32xf32>
    %306 = arith.addf %304, %305 : vector<8x32xf32>
    %307 = arith.negf %306 : vector<8x32xf32>
    %308 = math.exp %307 : vector<8x32xf32>
    %cst_62 = arith.constant 1.000000e+00 : f32
    %309 = vector.broadcast %cst_62 : f32 to vector<8x32xf32>
    %310 = arith.addf %309, %308 : vector<8x32xf32>
    %311 = arith.divf %309, %310 : vector<8x32xf32>
    %312 = vector.extract_strided_slice %294 {offsets = [0, 64], sizes = [8, 32], strides = [1, 1]} : vector<8x96xf32> to vector<8x32xf32>
    %313 = vector.extract_strided_slice %295 {offsets = [0, 64], sizes = [8, 32], strides = [1, 1]} : vector<8x96xf32> to vector<8x32xf32>
    %314 = vector.broadcast %11 : vector<1x32xf32> to vector<8x32xf32>
    %315 = arith.addf %313, %314 : vector<8x32xf32>
    %316 = arith.mulf %303, %315 : vector<8x32xf32>
    %317 = arith.addf %312, %316 : vector<8x32xf32>
    %318 = math.tanh %317 : vector<8x32xf32>
    %cst_63 = arith.constant 1.000000e+00 : f32
    %319 = vector.broadcast %cst_63 : f32 to vector<8x32xf32>
    %320 = arith.subf %319, %311 : vector<8x32xf32>
    %321 = arith.mulf %320, %318 : vector<8x32xf32>
    %322 = arith.mulf %311, %261 : vector<8x32xf32>
    %323 = arith.addf %321, %322 : vector<8x32xf32>
    %324 = vector.extract_strided_slice %5 {offsets = [40, 0], sizes = [8, 96], strides = [1, 1]} : vector<64x96xf32> to vector<8x96xf32>
    %cst_64 = arith.constant dense<0.000000e+00> : vector<8x96xf32>
    %325 = tpu.matmul %291, %6, %cst_64 {dimension_numbers = #tpu.dot_dimension_numbers<[1], [0], [0], [1], [0, 0, 1, 1], [], []>} : vector<8x32xf32>, vector<32x96xf32>, vector<8x96xf32> -> vector<8x96xf32>
    %326 = vector.extract_strided_slice %324 {offsets = [0, 0], sizes = [8, 32], strides = [1, 1]} : vector<8x96xf32> to vector<8x32xf32>
    %327 = vector.extract_strided_slice %325 {offsets = [0, 0], sizes = [8, 32], strides = [1, 1]} : vector<8x96xf32> to vector<8x32xf32>
    %328 = arith.addf %326, %327 : vector<8x32xf32>
    %329 = arith.negf %328 : vector<8x32xf32>
    %330 = math.exp %329 : vector<8x32xf32>
    %cst_65 = arith.constant 1.000000e+00 : f32
    %331 = vector.broadcast %cst_65 : f32 to vector<8x32xf32>
    %332 = arith.addf %331, %330 : vector<8x32xf32>
    %333 = arith.divf %331, %332 : vector<8x32xf32>
    %334 = vector.extract_strided_slice %324 {offsets = [0, 32], sizes = [8, 32], strides = [1, 1]} : vector<8x96xf32> to vector<8x32xf32>
    %335 = vector.extract_strided_slice %325 {offsets = [0, 32], sizes = [8, 32], strides = [1, 1]} : vector<8x96xf32> to vector<8x32xf32>
    %336 = arith.addf %334, %335 : vector<8x32xf32>
    %337 = arith.negf %336 : vector<8x32xf32>
    %338 = math.exp %337 : vector<8x32xf32>
    %cst_66 = arith.constant 1.000000e+00 : f32
    %339 = vector.broadcast %cst_66 : f32 to vector<8x32xf32>
    %340 = arith.addf %339, %338 : vector<8x32xf32>
    %341 = arith.divf %339, %340 : vector<8x32xf32>
    %342 = vector.extract_strided_slice %324 {offsets = [0, 64], sizes = [8, 32], strides = [1, 1]} : vector<8x96xf32> to vector<8x32xf32>
    %343 = vector.extract_strided_slice %325 {offsets = [0, 64], sizes = [8, 32], strides = [1, 1]} : vector<8x96xf32> to vector<8x32xf32>
    %344 = vector.broadcast %10 : vector<1x32xf32> to vector<8x32xf32>
    %345 = arith.addf %343, %344 : vector<8x32xf32>
    %346 = arith.mulf %333, %345 : vector<8x32xf32>
    %347 = arith.addf %342, %346 : vector<8x32xf32>
    %348 = math.tanh %347 : vector<8x32xf32>
    %cst_67 = arith.constant 1.000000e+00 : f32
    %349 = vector.broadcast %cst_67 : f32 to vector<8x32xf32>
    %350 = arith.subf %349, %341 : vector<8x32xf32>
    %351 = arith.mulf %350, %348 : vector<8x32xf32>
    %352 = arith.mulf %341, %291 : vector<8x32xf32>
    %353 = arith.addf %351, %352 : vector<8x32xf32>
    %cst_68 = arith.constant dense<0.000000e+00> : vector<8x96xf32>
    %354 = tpu.matmul %353, %7, %cst_68 {dimension_numbers = #tpu.dot_dimension_numbers<[1], [0], [0], [1], [0, 0, 1, 1], [], []>} : vector<8x32xf32>, vector<32x96xf32>, vector<8x96xf32> -> vector<8x96xf32>
    %355 = vector.broadcast %9 : vector<1x96xf32> to vector<8x96xf32>
    %356 = arith.addf %354, %355 : vector<8x96xf32>
    %cst_69 = arith.constant dense<0.000000e+00> : vector<8x96xf32>
    %357 = tpu.matmul %323, %8, %cst_69 {dimension_numbers = #tpu.dot_dimension_numbers<[1], [0], [0], [1], [0, 0, 1, 1], [], []>} : vector<8x32xf32>, vector<32x96xf32>, vector<8x96xf32> -> vector<8x96xf32>
    %358 = vector.extract_strided_slice %356 {offsets = [0, 0], sizes = [8, 32], strides = [1, 1]} : vector<8x96xf32> to vector<8x32xf32>
    %359 = vector.extract_strided_slice %357 {offsets = [0, 0], sizes = [8, 32], strides = [1, 1]} : vector<8x96xf32> to vector<8x32xf32>
    %360 = arith.addf %358, %359 : vector<8x32xf32>
    %361 = arith.negf %360 : vector<8x32xf32>
    %362 = math.exp %361 : vector<8x32xf32>
    %cst_70 = arith.constant 1.000000e+00 : f32
    %363 = vector.broadcast %cst_70 : f32 to vector<8x32xf32>
    %364 = arith.addf %363, %362 : vector<8x32xf32>
    %365 = arith.divf %363, %364 : vector<8x32xf32>
    %366 = vector.extract_strided_slice %356 {offsets = [0, 32], sizes = [8, 32], strides = [1, 1]} : vector<8x96xf32> to vector<8x32xf32>
    %367 = vector.extract_strided_slice %357 {offsets = [0, 32], sizes = [8, 32], strides = [1, 1]} : vector<8x96xf32> to vector<8x32xf32>
    %368 = arith.addf %366, %367 : vector<8x32xf32>
    %369 = arith.negf %368 : vector<8x32xf32>
    %370 = math.exp %369 : vector<8x32xf32>
    %cst_71 = arith.constant 1.000000e+00 : f32
    %371 = vector.broadcast %cst_71 : f32 to vector<8x32xf32>
    %372 = arith.addf %371, %370 : vector<8x32xf32>
    %373 = arith.divf %371, %372 : vector<8x32xf32>
    %374 = vector.extract_strided_slice %356 {offsets = [0, 64], sizes = [8, 32], strides = [1, 1]} : vector<8x96xf32> to vector<8x32xf32>
    %375 = vector.extract_strided_slice %357 {offsets = [0, 64], sizes = [8, 32], strides = [1, 1]} : vector<8x96xf32> to vector<8x32xf32>
    %376 = vector.broadcast %11 : vector<1x32xf32> to vector<8x32xf32>
    %377 = arith.addf %375, %376 : vector<8x32xf32>
    %378 = arith.mulf %365, %377 : vector<8x32xf32>
    %379 = arith.addf %374, %378 : vector<8x32xf32>
    %380 = math.tanh %379 : vector<8x32xf32>
    %cst_72 = arith.constant 1.000000e+00 : f32
    %381 = vector.broadcast %cst_72 : f32 to vector<8x32xf32>
    %382 = arith.subf %381, %373 : vector<8x32xf32>
    %383 = arith.mulf %382, %380 : vector<8x32xf32>
    %384 = arith.mulf %373, %323 : vector<8x32xf32>
    %385 = arith.addf %383, %384 : vector<8x32xf32>
    %386 = vector.extract_strided_slice %5 {offsets = [48, 0], sizes = [8, 96], strides = [1, 1]} : vector<64x96xf32> to vector<8x96xf32>
    %cst_73 = arith.constant dense<0.000000e+00> : vector<8x96xf32>
    %387 = tpu.matmul %353, %6, %cst_73 {dimension_numbers = #tpu.dot_dimension_numbers<[1], [0], [0], [1], [0, 0, 1, 1], [], []>} : vector<8x32xf32>, vector<32x96xf32>, vector<8x96xf32> -> vector<8x96xf32>
    %388 = vector.extract_strided_slice %386 {offsets = [0, 0], sizes = [8, 32], strides = [1, 1]} : vector<8x96xf32> to vector<8x32xf32>
    %389 = vector.extract_strided_slice %387 {offsets = [0, 0], sizes = [8, 32], strides = [1, 1]} : vector<8x96xf32> to vector<8x32xf32>
    %390 = arith.addf %388, %389 : vector<8x32xf32>
    %391 = arith.negf %390 : vector<8x32xf32>
    %392 = math.exp %391 : vector<8x32xf32>
    %cst_74 = arith.constant 1.000000e+00 : f32
    %393 = vector.broadcast %cst_74 : f32 to vector<8x32xf32>
    %394 = arith.addf %393, %392 : vector<8x32xf32>
    %395 = arith.divf %393, %394 : vector<8x32xf32>
    %396 = vector.extract_strided_slice %386 {offsets = [0, 32], sizes = [8, 32], strides = [1, 1]} : vector<8x96xf32> to vector<8x32xf32>
    %397 = vector.extract_strided_slice %387 {offsets = [0, 32], sizes = [8, 32], strides = [1, 1]} : vector<8x96xf32> to vector<8x32xf32>
    %398 = arith.addf %396, %397 : vector<8x32xf32>
    %399 = arith.negf %398 : vector<8x32xf32>
    %400 = math.exp %399 : vector<8x32xf32>
    %cst_75 = arith.constant 1.000000e+00 : f32
    %401 = vector.broadcast %cst_75 : f32 to vector<8x32xf32>
    %402 = arith.addf %401, %400 : vector<8x32xf32>
    %403 = arith.divf %401, %402 : vector<8x32xf32>
    %404 = vector.extract_strided_slice %386 {offsets = [0, 64], sizes = [8, 32], strides = [1, 1]} : vector<8x96xf32> to vector<8x32xf32>
    %405 = vector.extract_strided_slice %387 {offsets = [0, 64], sizes = [8, 32], strides = [1, 1]} : vector<8x96xf32> to vector<8x32xf32>
    %406 = vector.broadcast %10 : vector<1x32xf32> to vector<8x32xf32>
    %407 = arith.addf %405, %406 : vector<8x32xf32>
    %408 = arith.mulf %395, %407 : vector<8x32xf32>
    %409 = arith.addf %404, %408 : vector<8x32xf32>
    %410 = math.tanh %409 : vector<8x32xf32>
    %cst_76 = arith.constant 1.000000e+00 : f32
    %411 = vector.broadcast %cst_76 : f32 to vector<8x32xf32>
    %412 = arith.subf %411, %403 : vector<8x32xf32>
    %413 = arith.mulf %412, %410 : vector<8x32xf32>
    %414 = arith.mulf %403, %353 : vector<8x32xf32>
    %415 = arith.addf %413, %414 : vector<8x32xf32>
    %cst_77 = arith.constant dense<0.000000e+00> : vector<8x96xf32>
    %416 = tpu.matmul %415, %7, %cst_77 {dimension_numbers = #tpu.dot_dimension_numbers<[1], [0], [0], [1], [0, 0, 1, 1], [], []>} : vector<8x32xf32>, vector<32x96xf32>, vector<8x96xf32> -> vector<8x96xf32>
    %417 = vector.broadcast %9 : vector<1x96xf32> to vector<8x96xf32>
    %418 = arith.addf %416, %417 : vector<8x96xf32>
    %cst_78 = arith.constant dense<0.000000e+00> : vector<8x96xf32>
    %419 = tpu.matmul %385, %8, %cst_78 {dimension_numbers = #tpu.dot_dimension_numbers<[1], [0], [0], [1], [0, 0, 1, 1], [], []>} : vector<8x32xf32>, vector<32x96xf32>, vector<8x96xf32> -> vector<8x96xf32>
    %420 = vector.extract_strided_slice %418 {offsets = [0, 0], sizes = [8, 32], strides = [1, 1]} : vector<8x96xf32> to vector<8x32xf32>
    %421 = vector.extract_strided_slice %419 {offsets = [0, 0], sizes = [8, 32], strides = [1, 1]} : vector<8x96xf32> to vector<8x32xf32>
    %422 = arith.addf %420, %421 : vector<8x32xf32>
    %423 = arith.negf %422 : vector<8x32xf32>
    %424 = math.exp %423 : vector<8x32xf32>
    %cst_79 = arith.constant 1.000000e+00 : f32
    %425 = vector.broadcast %cst_79 : f32 to vector<8x32xf32>
    %426 = arith.addf %425, %424 : vector<8x32xf32>
    %427 = arith.divf %425, %426 : vector<8x32xf32>
    %428 = vector.extract_strided_slice %418 {offsets = [0, 32], sizes = [8, 32], strides = [1, 1]} : vector<8x96xf32> to vector<8x32xf32>
    %429 = vector.extract_strided_slice %419 {offsets = [0, 32], sizes = [8, 32], strides = [1, 1]} : vector<8x96xf32> to vector<8x32xf32>
    %430 = arith.addf %428, %429 : vector<8x32xf32>
    %431 = arith.negf %430 : vector<8x32xf32>
    %432 = math.exp %431 : vector<8x32xf32>
    %cst_80 = arith.constant 1.000000e+00 : f32
    %433 = vector.broadcast %cst_80 : f32 to vector<8x32xf32>
    %434 = arith.addf %433, %432 : vector<8x32xf32>
    %435 = arith.divf %433, %434 : vector<8x32xf32>
    %436 = vector.extract_strided_slice %418 {offsets = [0, 64], sizes = [8, 32], strides = [1, 1]} : vector<8x96xf32> to vector<8x32xf32>
    %437 = vector.extract_strided_slice %419 {offsets = [0, 64], sizes = [8, 32], strides = [1, 1]} : vector<8x96xf32> to vector<8x32xf32>
    %438 = vector.broadcast %11 : vector<1x32xf32> to vector<8x32xf32>
    %439 = arith.addf %437, %438 : vector<8x32xf32>
    %440 = arith.mulf %427, %439 : vector<8x32xf32>
    %441 = arith.addf %436, %440 : vector<8x32xf32>
    %442 = math.tanh %441 : vector<8x32xf32>
    %cst_81 = arith.constant 1.000000e+00 : f32
    %443 = vector.broadcast %cst_81 : f32 to vector<8x32xf32>
    %444 = arith.subf %443, %435 : vector<8x32xf32>
    %445 = arith.mulf %444, %442 : vector<8x32xf32>
    %446 = arith.mulf %435, %385 : vector<8x32xf32>
    %447 = arith.addf %445, %446 : vector<8x32xf32>
    %448 = vector.extract_strided_slice %5 {offsets = [56, 0], sizes = [8, 96], strides = [1, 1]} : vector<64x96xf32> to vector<8x96xf32>
    %cst_82 = arith.constant dense<0.000000e+00> : vector<8x96xf32>
    %449 = tpu.matmul %415, %6, %cst_82 {dimension_numbers = #tpu.dot_dimension_numbers<[1], [0], [0], [1], [0, 0, 1, 1], [], []>} : vector<8x32xf32>, vector<32x96xf32>, vector<8x96xf32> -> vector<8x96xf32>
    %450 = vector.extract_strided_slice %448 {offsets = [0, 0], sizes = [8, 32], strides = [1, 1]} : vector<8x96xf32> to vector<8x32xf32>
    %451 = vector.extract_strided_slice %449 {offsets = [0, 0], sizes = [8, 32], strides = [1, 1]} : vector<8x96xf32> to vector<8x32xf32>
    %452 = arith.addf %450, %451 : vector<8x32xf32>
    %453 = arith.negf %452 : vector<8x32xf32>
    %454 = math.exp %453 : vector<8x32xf32>
    %cst_83 = arith.constant 1.000000e+00 : f32
    %455 = vector.broadcast %cst_83 : f32 to vector<8x32xf32>
    %456 = arith.addf %455, %454 : vector<8x32xf32>
    %457 = arith.divf %455, %456 : vector<8x32xf32>
    %458 = vector.extract_strided_slice %448 {offsets = [0, 32], sizes = [8, 32], strides = [1, 1]} : vector<8x96xf32> to vector<8x32xf32>
    %459 = vector.extract_strided_slice %449 {offsets = [0, 32], sizes = [8, 32], strides = [1, 1]} : vector<8x96xf32> to vector<8x32xf32>
    %460 = arith.addf %458, %459 : vector<8x32xf32>
    %461 = arith.negf %460 : vector<8x32xf32>
    %462 = math.exp %461 : vector<8x32xf32>
    %cst_84 = arith.constant 1.000000e+00 : f32
    %463 = vector.broadcast %cst_84 : f32 to vector<8x32xf32>
    %464 = arith.addf %463, %462 : vector<8x32xf32>
    %465 = arith.divf %463, %464 : vector<8x32xf32>
    %466 = vector.extract_strided_slice %448 {offsets = [0, 64], sizes = [8, 32], strides = [1, 1]} : vector<8x96xf32> to vector<8x32xf32>
    %467 = vector.extract_strided_slice %449 {offsets = [0, 64], sizes = [8, 32], strides = [1, 1]} : vector<8x96xf32> to vector<8x32xf32>
    %468 = vector.broadcast %10 : vector<1x32xf32> to vector<8x32xf32>
    %469 = arith.addf %467, %468 : vector<8x32xf32>
    %470 = arith.mulf %457, %469 : vector<8x32xf32>
    %471 = arith.addf %466, %470 : vector<8x32xf32>
    %472 = math.tanh %471 : vector<8x32xf32>
    %cst_85 = arith.constant 1.000000e+00 : f32
    %473 = vector.broadcast %cst_85 : f32 to vector<8x32xf32>
    %474 = arith.subf %473, %465 : vector<8x32xf32>
    %475 = arith.mulf %474, %472 : vector<8x32xf32>
    %476 = arith.mulf %465, %415 : vector<8x32xf32>
    %477 = arith.addf %475, %476 : vector<8x32xf32>
    %cst_86 = arith.constant dense<0.000000e+00> : vector<8x96xf32>
    %478 = tpu.matmul %477, %7, %cst_86 {dimension_numbers = #tpu.dot_dimension_numbers<[1], [0], [0], [1], [0, 0, 1, 1], [], []>} : vector<8x32xf32>, vector<32x96xf32>, vector<8x96xf32> -> vector<8x96xf32>
    %479 = vector.broadcast %9 : vector<1x96xf32> to vector<8x96xf32>
    %480 = arith.addf %478, %479 : vector<8x96xf32>
    %cst_87 = arith.constant dense<0.000000e+00> : vector<8x96xf32>
    %481 = tpu.matmul %447, %8, %cst_87 {dimension_numbers = #tpu.dot_dimension_numbers<[1], [0], [0], [1], [0, 0, 1, 1], [], []>} : vector<8x32xf32>, vector<32x96xf32>, vector<8x96xf32> -> vector<8x96xf32>
    %482 = vector.extract_strided_slice %480 {offsets = [0, 0], sizes = [8, 32], strides = [1, 1]} : vector<8x96xf32> to vector<8x32xf32>
    %483 = vector.extract_strided_slice %481 {offsets = [0, 0], sizes = [8, 32], strides = [1, 1]} : vector<8x96xf32> to vector<8x32xf32>
    %484 = arith.addf %482, %483 : vector<8x32xf32>
    %485 = arith.negf %484 : vector<8x32xf32>
    %486 = math.exp %485 : vector<8x32xf32>
    %cst_88 = arith.constant 1.000000e+00 : f32
    %487 = vector.broadcast %cst_88 : f32 to vector<8x32xf32>
    %488 = arith.addf %487, %486 : vector<8x32xf32>
    %489 = arith.divf %487, %488 : vector<8x32xf32>
    %490 = vector.extract_strided_slice %480 {offsets = [0, 32], sizes = [8, 32], strides = [1, 1]} : vector<8x96xf32> to vector<8x32xf32>
    %491 = vector.extract_strided_slice %481 {offsets = [0, 32], sizes = [8, 32], strides = [1, 1]} : vector<8x96xf32> to vector<8x32xf32>
    %492 = arith.addf %490, %491 : vector<8x32xf32>
    %493 = arith.negf %492 : vector<8x32xf32>
    %494 = math.exp %493 : vector<8x32xf32>
    %cst_89 = arith.constant 1.000000e+00 : f32
    %495 = vector.broadcast %cst_89 : f32 to vector<8x32xf32>
    %496 = arith.addf %495, %494 : vector<8x32xf32>
    %497 = arith.divf %495, %496 : vector<8x32xf32>
    %498 = vector.extract_strided_slice %480 {offsets = [0, 64], sizes = [8, 32], strides = [1, 1]} : vector<8x96xf32> to vector<8x32xf32>
    %499 = vector.extract_strided_slice %481 {offsets = [0, 64], sizes = [8, 32], strides = [1, 1]} : vector<8x96xf32> to vector<8x32xf32>
    %500 = vector.broadcast %11 : vector<1x32xf32> to vector<8x32xf32>
    %501 = arith.addf %499, %500 : vector<8x32xf32>
    %502 = arith.mulf %489, %501 : vector<8x32xf32>
    %503 = arith.addf %498, %502 : vector<8x32xf32>
    %504 = math.tanh %503 : vector<8x32xf32>
    %cst_90 = arith.constant 1.000000e+00 : f32
    %505 = vector.broadcast %cst_90 : f32 to vector<8x32xf32>
    %506 = arith.subf %505, %497 : vector<8x32xf32>
    %507 = arith.mulf %506, %504 : vector<8x32xf32>
    %508 = arith.mulf %497, %447 : vector<8x32xf32>
    %509 = arith.addf %507, %508 : vector<8x32xf32>
    %510 = tpu.concatenate %477, %509 in 0 : vector<8x32xf32>, vector<8x32xf32> -> vector<16x32xf32>
    %c0_91 = arith.constant 0 : index
    %c0_92 = arith.constant 0 : index
    %511 = vector.load %arg9[%c0_91, %c0_92] : memref<8x16xf32, #tpu.memory_space<vmem>>, vector<8x16xf32>
    %cst_93 = arith.constant dense<0.000000e+00> : vector<8x32xf32>
    %512 = tpu.matmul %511, %510, %cst_93 {dimension_numbers = #tpu.dot_dimension_numbers<[1], [0], [0], [1], [0, 0, 1, 1], [], []>} : vector<8x16xf32>, vector<16x32xf32>, vector<8x32xf32> -> vector<8x32xf32>
    %c0_94 = arith.constant 0 : index
    %c0_95 = arith.constant 0 : index
    %513 = vector.load %arg10[%c0_94, %c0_95] : memref<8x16xf32, #tpu.memory_space<vmem>>, vector<8x16xf32>
    %cst_96 = arith.constant dense<0.000000e+00> : vector<8x32xf32>
    %514 = tpu.matmul %513, %510, %cst_96 {dimension_numbers = #tpu.dot_dimension_numbers<[1], [0], [0], [1], [0, 0, 1, 1], [], []>} : vector<8x16xf32>, vector<16x32xf32>, vector<8x32xf32> -> vector<8x32xf32>
    %c0_97 = arith.constant 0 : index
    %c0_98 = arith.constant 0 : index
    %515 = vector.load %arg11[%c0_97, %c0_98] : memref<32x32xf32, #tpu.memory_space<vmem>>, vector<32x32xf32>
    %cst_99 = arith.constant dense<0.000000e+00> : vector<8x32xf32>
    %516 = tpu.matmul %512, %515, %cst_99 {dimension_numbers = #tpu.dot_dimension_numbers<[1], [0], [0], [1], [0, 0, 1, 1], [], []>} : vector<8x32xf32>, vector<32x32xf32>, vector<8x32xf32> -> vector<8x32xf32>
    %c0_100 = arith.constant 0 : index
    %c0_101 = arith.constant 0 : index
    %517 = vector.load %arg12[%c0_100, %c0_101] : memref<32x32xf32, #tpu.memory_space<vmem>>, vector<32x32xf32>
    %cst_102 = arith.constant dense<0.000000e+00> : vector<8x32xf32>
    %518 = tpu.matmul %514, %517, %cst_102 {dimension_numbers = #tpu.dot_dimension_numbers<[1], [0], [0], [1], [0, 0, 1, 1], [], []>} : vector<8x32xf32>, vector<32x32xf32>, vector<8x32xf32> -> vector<8x32xf32>
    %519 = arith.addf %516, %518 : vector<8x32xf32>
    %c0_103 = arith.constant 0 : index
    %c0_104 = arith.constant 0 : index
    %520 = vector.load %arg13[%c0_103, %c0_104] : memref<1x32xf32, #tpu.memory_space<vmem>>, vector<1x32xf32>
    %521 = vector.broadcast %520 : vector<1x32xf32> to vector<8x32xf32>
    %522 = arith.addf %519, %521 : vector<8x32xf32>
    %cst_105 = arith.constant 0.000000e+00 : f32
    %523 = vector.broadcast %cst_105 : f32 to vector<8x32xf32>
    %524 = arith.maximumf %522, %523 : vector<8x32xf32>
    %c0_106 = arith.constant 0 : index
    %c0_107 = arith.constant 0 : index
    %525 = vector.load %arg14[%c0_106, %c0_107] : memref<32x18xf32, #tpu.memory_space<vmem>>, vector<32x18xf32>
    %cst_108 = arith.constant dense<0.000000e+00> : vector<8x18xf32>
    %526 = tpu.matmul %524, %525, %cst_108 {dimension_numbers = #tpu.dot_dimension_numbers<[1], [0], [0], [1], [0, 0, 1, 1], [], []>} : vector<8x32xf32>, vector<32x18xf32>, vector<8x18xf32> -> vector<8x18xf32>
    %c0_109 = arith.constant 0 : index
    %c0_110 = arith.constant 0 : index
    %527 = vector.load %arg15[%c0_109, %c0_110] : memref<1x18xf32, #tpu.memory_space<vmem>>, vector<1x18xf32>
    %528 = vector.broadcast %527 : vector<1x18xf32> to vector<8x18xf32>
    %529 = arith.addf %526, %528 : vector<8x18xf32>
    %cst_111 = arith.constant 0.000000e+00 : f32
    %530 = vector.broadcast %cst_111 : f32 to vector<8x18xf32>
    %531 = arith.maximumf %529, %530 : vector<8x18xf32>
    %c0_112 = arith.constant 0 : index
    %c0_113 = arith.constant 0 : index
    %532 = vector.load %arg16[%c0_112, %c0_113] : memref<18x2xf32, #tpu.memory_space<vmem>>, vector<18x2xf32>
    %cst_114 = arith.constant dense<0.000000e+00> : vector<8x2xf32>
    %533 = tpu.matmul %531, %532, %cst_114 {dimension_numbers = #tpu.dot_dimension_numbers<[1], [0], [0], [1], [0, 0, 1, 1], [], []>} : vector<8x18xf32>, vector<18x2xf32>, vector<8x2xf32> -> vector<8x2xf32>
    %c0_115 = arith.constant 0 : index
    %c0_116 = arith.constant 0 : index
    %534 = vector.load %arg17[%c0_115, %c0_116] : memref<1x2xf32, #tpu.memory_space<vmem>>, vector<1x2xf32>
    %535 = vector.broadcast %534 : vector<1x2xf32> to vector<8x2xf32>
    %536 = arith.addf %533, %535 : vector<8x2xf32>
    %c0_117 = arith.constant 0 : index
    %c0_118 = arith.constant 0 : index
    %537 = vector.load %arg18[%c0_117, %c0_118] : memref<8x2xf32, #tpu.memory_space<vmem>>, vector<8x2xf32>
    tpu.vector_store %arg18[%c0_117, %c0_118], %536 {strides = array<i32>} : memref<8x2xf32, #tpu.memory_space<vmem>>, vector<8x2xf32>,
    return
  }
}

</mosaic_0001>

<bundles_post_ra>
// kernel: tpu_custom_call.1
= control target key start
LH: loop header
LB: loop body
LE: loop exit
PB: predicated region body
PF: predicated region fallthrough
CT: control target
= control target key end

     0   :  { %s4674_s0 = inlined_call_operand.vmem [shape: f32[64,16], index: 0, kind: input, shape index: {}]   ;;  %s4675_s1 = inlined_call_operand.hbm [shape: f32[16,96], index: 1, kind: input, shape index: {}]   ;;  %s4676_s2 = inlined_call_operand.vmem [shape: f32[32,96], index: 2, kind: input, shape index: {}]   ;;  %s4677_s3 = inlined_call_operand.hbm [shape: f32[1,96], index: 3, kind: input, shape index: {}]   ;;  %s4678_s4 = inlined_call_operand.hbm [shape: f32[1,32], index: 4, kind: input, shape index: {}]   ;;  %s4679_s5 = inlined_call_operand.vmem [shape: f32[32,96], index: 5, kind: input, shape index: {}]   ;;  %s4680_s6 = inlined_call_operand.vmem [shape: f32[32,96], index: 6, kind: input, shape index: {}]   ;;  %s4681_s7 = inlined_call_operand.hbm [shape: f32[1,96], index: 7, kind: input, shape index: {}]   ;;  %s4682_s8 = inlined_call_operand.hbm [shape: f32[1,32], index: 8, kind: input, shape index: {}]   ;;  %s4683_s9 = inlined_call_operand.vmem [shape: f32[8,16], index: 9, kind: input, shape index: {}]   ;;  %s4684_s10 = inlined_call_operand.hbm [shape: f32[8,16], index: 10, kind: input, shape index: {}]   ;;  %s4685_s11 = inlined_call_operand.vmem [shape: f32[32,32], index: 11, kind: input, shape index: {}]   ;;  %s4686_s12 = inlined_call_operand.vmem [shape: f32[32,32], index: 12, kind: input, shape index: {}]   ;;  %s4687_s13 = inlined_call_operand.vmem [shape: f32[1,32], index: 13, kind: input, shape index: {}]   ;;  %s4688_s14 = inlined_call_operand.vmem [shape: f32[32,18], index: 14, kind: input, shape index: {}]   ;;  %s4689_s15 = inlined_call_operand.vmem [shape: f32[1,18], index: 15, kind: input, shape index: {}]   ;;  %s4690_s16 = inlined_call_operand.vmem [shape: f32[18,2], index: 16, kind: input, shape index: {}]   ;;  %s4691_s17 = inlined_call_operand.vmem [shape: f32[1,2], index: 17, kind: input, shape index: {}]   ;;  %s4692_s18 = inlined_call_operand.vmem [shape: f32[8,2], index: 18, kind: output, shape index: {}]  }
   0x1   :  { %4696 = sst [smem:[#allocation16_spill]] %s4674_s0 }
   0x2   :  { %4697 = sst [smem:[#allocation17_spill]] %s4675_s1 }
   0x3   :  { %4698 = sst [smem:[#allocation18_spill]] %s4676_s2 }
   0x4   :  { %23 = vsyncpa [#allocation3], 0 }
   0x5   :  { %24 = vsyncpa [#allocation5], 0 }
   0x6   :  { %25 = vsyncpa [#allocation8], 0 }
   0x7   :  { %26 = vsyncpa [#allocation11], 0  ;;  %s3981_s27 = smov [#allocation4]   ;;  %s3982_s29 = smov [#allocation7]  }
   0x8   :  { %s49_s28 = sshll.u32 %s3981_s27, 4  ;;  %s73_s30 = sshll.u32 %s3982_s29, 4  ;;  %s50_s28 = int_to_ptr.vmem [resolvable:$true] %s49_s28  ;;  %s74_s30 = int_to_ptr.vmem [resolvable:$true] %s73_s30 }
   0x9   :  { %s3841_s1 = scalar_lea.hbm %s4677_s3, 16 }
   0xa   :  { %p3842_p0 = scmp.ne.s32.totalorder %s4677_s3, %s3841_s1  ;;  %p3845_p1 = scmp.lt.u32.totalorder %s3841_s1, %s4677_s3 }
   0xc   :  { %p3847_p2 = pnand %p3845_p1, %p3842_p0 }
   0xe   :  { %3850 = shalt.err (!%p3847_p2)
}
   0xf   :  { %s3851_s23 = scalar_lea.vmem %s50_s28, 16  ;;  %s3855_s24 = scalar_lea.vmem %s50_s28, 32 }
  0x10   :  { %p3852_p3 = scmp.ne.s32.totalorder %s50_s28, %s3851_s23  ;;  %p3856_p4 = scmp.lt.s32.totalorder %s50_s28, %s50_s28 }
  0x11   :  { %p3857_p5 = scmp.lt.s32.totalorder %s3855_s24, %s3851_s23 }
  0x13   :  { %p3858_p6 = por %p3857_p5, %p3856_p4 }
  0x15   :  { %p3859_p7 = pnand %p3858_p6, %p3852_p3 }
  0x17   :  { %3862 = shalt.err (!%p3859_p7)
}
  0x18   :  { %52 = dma.hbm_to_vmem [thread:$0]  %s4677_s3, 16, %s50_s28, [#allocation5]  }
  0x19   :  { %s3863_s0 = scalar_lea.hbm %s4681_s7, 16 }
  0x1a   :  { %p3864_p8 = scmp.ne.s32.totalorder %s4681_s7, %s3863_s0  ;;  %p3867_p9 = scmp.lt.u32.totalorder %s3863_s0, %s4681_s7 }
  0x1c   :  { %p3869_p10 = pnand %p3867_p9, %p3864_p8 }
  0x1e   :  { %3872 = shalt.err (!%p3869_p10)
}
  0x1f   :  { %s3873_s22 = scalar_lea.vmem %s74_s30, 16  ;;  %s3877_s2 = scalar_lea.vmem %s74_s30, 32 }
  0x20   :  { %p3874_p11 = scmp.ne.s32.totalorder %s74_s30, %s3873_s22  ;;  %p3878_p12 = scmp.lt.s32.totalorder %s74_s30, %s74_s30 }
  0x21   :  { %p3879_p13 = scmp.lt.s32.totalorder %s3877_s2, %s3873_s22 }
  0x23   :  { %p3880_p0 = por %p3879_p13, %p3878_p12 }
  0x25   :  { %p3881_p1 = pnand %p3880_p0, %p3874_p11 }
  0x27   :  { %3884 = shalt.err (!%p3881_p1)
}
  0x28   :  { %76 = dma.hbm_to_vmem [thread:$0]  %s4681_s7, 16, %s74_s30, [#allocation8]  }
  0x29   :  { %s3983_s23 = smov [#allocation2]   ;;  %s4699_s27 = sld [smem:[#allocation17_spill]] }
  0x2a   :  { %s34_s24 = sshll.u32 %s3983_s23, 4  ;;  %s35_s24 = int_to_ptr.vmem [resolvable:$true] %s34_s24 }
  0x2f   :  { %s3885_s29 = scalar_lea.hbm %s4699_s27, 256 }
  0x30   :  { %p3886_p2 = scmp.ne.s32.totalorder %s4699_s27, %s3885_s29  ;;  %p3889_p3 = scmp.lt.u32.totalorder %s3885_s29, %s4699_s27 }
  0x32   :  { %p3891_p4 = pnand %p3889_p3, %p3886_p2 }
  0x34   :  { %3894 = shalt.err (!%p3891_p4)
}
  0x35   :  { %s3895_s21 = scalar_lea.vmem %s35_s24, 256  ;;  %p3900_p6 = scmp.lt.s32.totalorder %s35_s24, %s35_s24 }
  0x36   :  { %p3896_p5 = scmp.ne.s32.totalorder %s35_s24, %s3895_s21  ;;  %p3901_p7 = scmp.lt.s32.totalorder %s3895_s21, %s3895_s21 }
  0x38   :  { %p3902_p8 = por %p3901_p7, %p3900_p6 }
  0x3a   :  { %p3903_p9 = pnand %p3902_p8, %p3896_p5 }
  0x3c   :  { %3906 = shalt.err (!%p3903_p9)
}
  0x3d   :  { %s3984_s7 = smov 128   ;;  %s3985_s30 = smov 8  }
  0x3e   :  { %40 = dma.hbm_to_vmem [thread:$0]  %s4699_s27, 256, %s35_s24, [#allocation3], %s3984_s7, %s3984_s7, %s3985_s30  }
  0x3f   :  { %s3986_s3 = smov [#allocation6]   ;;  %s3987_s23 = smov [#allocation9]  }
  0x40   :  { %s59_s28 = sshll.u32 %s3986_s3, 4  ;;  %s83_s25 = sshll.u32 %s3987_s23, 4  ;;  %s60_s28 = int_to_ptr.vmem [resolvable:$true] %s59_s28  ;;  %s84_s25 = int_to_ptr.vmem [resolvable:$true] %s83_s25 }
  0x41   :  { %s3907_s0 = scalar_lea.hbm %s4678_s4, 16 }
  0x42   :  { %p3908_p10 = scmp.ne.s32.totalorder %s4678_s4, %s3907_s0  ;;  %p3911_p11 = scmp.lt.u32.totalorder %s3907_s0, %s4678_s4 }
  0x44   :  { %p3913_p12 = pnand %p3911_p11, %p3908_p10 }
  0x46   :  { %3916 = shalt.err (!%p3913_p12)
}
  0x47   :  { %s3917_s24 = scalar_lea.vmem %s60_s28, 16  ;;  %s3921_s27 = scalar_lea.vmem %s60_s28, 32 }
  0x48   :  { %p3918_p13 = scmp.ne.s32.totalorder %s60_s28, %s3917_s24  ;;  %p3922_p0 = scmp.lt.s32.totalorder %s60_s28, %s60_s28 }
  0x49   :  { %p3923_p1 = scmp.lt.s32.totalorder %s3921_s27, %s3917_s24 }
  0x4b   :  { %p3924_p2 = por %p3923_p1, %p3922_p0 }
  0x4d   :  { %p3925_p3 = pnand %p3924_p2, %p3918_p13 }
  0x4f   :  { %3928 = shalt.err (!%p3925_p3)
}
  0x50   :  { %62 = dma.hbm_to_vmem [thread:$0]  %s4678_s4, 16, %s60_s28, [#allocation5]  }
  0x51   :  { %s3929_s3 = scalar_lea.hbm %s4682_s8, 16 }
  0x52   :  { %p3930_p4 = scmp.ne.s32.totalorder %s4682_s8, %s3929_s3  ;;  %p3933_p5 = scmp.lt.u32.totalorder %s3929_s3, %s4682_s8 }
  0x54   :  { %p3935_p6 = pnand %p3933_p5, %p3930_p4 }
  0x56   :  { %3938 = shalt.err (!%p3935_p6)
}
  0x57   :  { %s3939_s19 = scalar_lea.vmem %s84_s25, 16  ;;  %s3943_s1 = scalar_lea.vmem %s84_s25, 32 }
  0x58   :  { %p3940_p7 = scmp.ne.s32.totalorder %s84_s25, %s3939_s19  ;;  %p3944_p8 = scmp.lt.s32.totalorder %s84_s25, %s84_s25 }
  0x59   :  { %p3945_p9 = scmp.lt.s32.totalorder %s3943_s1, %s3939_s19 }
  0x5b   :  { %p3946_p10 = por %p3945_p9, %p3944_p8 }
  0x5d   :  { %p3947_p11 = pnand %p3946_p10, %p3940_p7 }
  0x5f   :  { %3950 = shalt.err (!%p3947_p11)
}
  0x60   :  { %86 = dma.hbm_to_vmem [thread:$0]  %s4682_s8, 16, %s84_s25, [#allocation8]  }
  0x61   :  { %s3988_s20 = smov [#allocation10]   ;;  %s3951_s7 = scalar_lea.hbm %s4684_s10, 128 }
  0x62   :  { %s95_s21 = sshll.u32 %s3988_s20, 4  ;;  %p3952_p12 = scmp.ne.s32.totalorder %s4684_s10, %s3951_s7  ;;  %s96_s21 = int_to_ptr.vmem [resolvable:$true] %s95_s21 }
  0x63   :  { %p3955_p13 = scmp.lt.u32.totalorder %s3951_s7, %s4684_s10 }
  0x65   :  { %p3957_p0 = pnand %p3955_p13, %p3952_p12 }
  0x67   :  { %3960 = shalt.err (!%p3957_p0)
}
  0x68   :  { %s3961_s23 = scalar_lea.vmem %s96_s21, 128  ;;  %p3966_p2 = scmp.lt.s32.totalorder %s96_s21, %s96_s21 }
  0x69   :  { %p3962_p1 = scmp.ne.s32.totalorder %s96_s21, %s3961_s23  ;;  %p3967_p3 = scmp.lt.s32.totalorder %s3961_s23, %s3961_s23 }
  0x6b   :  { %p3968_p4 = por %p3967_p3, %p3966_p2 }
  0x6d   :  { %p3969_p5 = pnand %p3968_p4, %p3962_p1 }
  0x6f   :  { %3972 = shalt.err (!%p3969_p5)
}
  0x70   :  { %98 = dma.hbm_to_vmem [thread:$0]  %s4684_s10, 128, %s96_s21, [#allocation11]  }
  0x71   :  { %3973 = dma.done.wait [#allocation3], 256  }
  0x72   :  { %3974 = vsyncadd [#allocation3], 4294967040 }
  0x73   :  { %3975 = dma.done.wait [#allocation5], 32  }
  0x74   :  { %3976 = vsyncadd [#allocation5], 4294967264 }
  0x75   :  { %3977 = dma.done.wait [#allocation8], 32  }
  0x76   :  { %3978 = vsyncadd [#allocation8], 4294967264 }
  0x77   :  { %3979 = dma.done.wait [#allocation11], 128  }
  0x78   :  { %3980 = vsyncadd [#allocation11], 4294967168  ;;  %v3989_v0 = vmov 0.0|0.0   ;;  %vm3990_vm0 = vmmov 0   ;;  %v3991_v1 = vmov 0.0   ;;  %vm148_vm1 = vcmask 130048  }
  0x79   :  { %3560 = vmatprep.subr.bf16.mxu1 %v3989_v0  ;;  %3244 = vmatprep.mubr.msk.f32.mxu1 %vm3990_vm0, %v3991_v1  ;;  %v139_v2 = vld [vmem:[#allocation2] sm:$0xff]  ;;  %v140_v3 = vld [vmem:[#allocation2 + $0x8] sm:$0xff]  ;;  %s4700_s29 = sld [smem:[#allocation18_spill]]  ;;  %s4701_s28 = sld [smem:[#allocation16_spill]]  ;;  %v3015_v11 = vld [vmem:[#allocation6] ss:$0 sm:$0xff] }
  0x7a   :  { %v3556_v5 = vpack.c.bf16 %v140_v3, %v139_v2  ;;  %s3992_s7 = smov 64   ;;  %v4203_v20 = vld [vmem:[#allocation4] ss:$0 sm:$0xff]  ;;  %v286_v34 = vld [vmem:[%s4680_s6] sm:$0xff]  ;;  %v287_v35 = vld [vmem:[%s4680_s6 + $0x8] sm:$0xff]  ;;  %vm293_vm2 = vcmask 261120  }
  0x7b   :  { %379 = vrot.lane.b32.xlu0 %v3015_v11, %s3992_s7  ;;  %v4227_v37 = vpack.c.bf16 %v287_v35, %v286_v34  ;;  %v288_v38 = vld [vmem:[%s4680_s6 + $0x10] sm:$0xff]  ;;  %v289_v39 = vld [vmem:[%s4680_s6 + $0x18] sm:$0xff]  ;;  %v282_v40 = vld [vmem:[%s4679_s5] sm:$0xff]  ;;  %vm2921_vm3 = vcmask 1041408   ;;  %vm2917_vm4 = vcmask 146432   ;;  %vm2995_vm5 = vcmask 15360  }
  0x7c   :  { %3557 = vmatprep.subr.bf16.mxu0 %v3556_v5  ;;  %v283_v41 = vld [vmem:[%s4679_s5 + $0x8] sm:$0xff]  ;;  %v4246_v43 = vpack.c.bf16 %v289_v39, %v288_v38  ;;  %v284_v45 = vld [vmem:[%s4679_s5 + $0x10] sm:$0xff]  ;;  %v285_v46 = vld [vmem:[%s4679_s5 + $0x18] sm:$0xff]  ;;  %s3993_s5 = smov 96  }
  0x7d   :  { %3559 = vmatpush3.bf16.msra.mxu0 %v3556_v5  ;;  %v4248_v44 = vpack.c.bf16 %v283_v41, %v282_v40  ;;  %v4259_v47 = vpack.c.bf16 %v285_v46, %v284_v45  ;;  %v3019_v52 = vld [vmem:[#allocation9] ss:$0 sm:$0xff]  ;;  %v4316_v5 = vld [vmem:[#allocation7] ss:$0 sm:$0xff] }
  0x7e   :  { %3572 = vmatprep.subr.bf16.mxu0 %v3989_v0 }
  0x7f   :  { %v278_v4 = vld [vmem:[%s4700_s29] sm:$0xff]  ;;  %v279_v6 = vld [vmem:[%s4700_s29 + $0x8] sm:$0xff]  ;;  %v280_v9 = vld [vmem:[%s4700_s29 + $0x10] sm:$0xff] }
  0x80   :  { %v131_v7 = vld [vmem:[%s4701_s28] sm:$0xff]  ;;  %v4173_v8 = vpack.c.bf16 %v279_v6, %v278_v4  ;;  %v281_v10 = vld [vmem:[%s4700_s29 + $0x18] sm:$0xff]  ;;  %v132_v12 = vld [vmem:[%s4701_s28 + $0x8] sm:$0xff] }
  0x81   :  { %3224 = vmatprep.mubr.msk.f32.mxu0 %vm148_vm1, %v131_v7  ;;  %v4187_v13 = vpack.c.bf16 %v281_v10, %v280_v9  ;;  %v133_v31 = vld [vmem:[%s4701_s28 + $0x10] sm:$0xff]  ;;  %v134_v32 = vld [vmem:[%s4701_s28 + $0x18] sm:$0xff]  ;;  %v135_v33 = vld [vmem:[%s4701_s28 + $0x20] sm:$0xff] }
  0x82   :  { %3562 = vmatpush3.bf16.msra.mxu1 %v4173_v8  ;;  %3225 = vmatmul.mubr.msk.f32.vlgmr.msra.gmra.mrb[0].mxu0 %vm148_vm1, %v132_v12  ;;  %v136_v36 = vld [vmem:[%s4701_s28 + $0x28] sm:$0xff]  ;;  %v137_v42 = vld [vmem:[%s4701_s28 + $0x30] sm:$0xff]  ;;  %v138_v48 = vld [vmem:[%s4701_s28 + $0x38] sm:$0xff] }
  0x83   :  { %3563 = vmatprep.subr.bf16.mxu1 %v3989_v0  ;;  %3227 = vmatprep.mubr.msk.f32.mxu0 %vm148_vm1, %v133_v31 }
  0x84   :  { %3574 = vmatpush3.bf16.msra.mxu0 %v4227_v37 }
  0x85   :  { %3575 = vmatprep.subr.bf16.mxu0 %v3989_v0 }
  0x86   :  { %3565 = vmatpush3.bf16.msra.mxu1 %v4187_v13  ;;  %3228 = vmatmul.mubr.msk.f32.gmra.mrb[2].mxu0 %vm148_vm1, %v134_v32 }
  0x87   :  { %3566 = vmatprep.subr.bf16.mxu1 %v3989_v0  ;;  %3230 = vmatprep.mubr.msk.f32.mxu0 %vm148_vm1, %v135_v33 }
  0x88   :  { %3577 = vmatpush3.bf16.msra.mxu0 %v4246_v43 }
  0x89   :  { %3245 = vmatmul.mubr.f32.vlgmr.msra.gmra.mrb[0].mxu1 %v3991_v1  ;;  %3584 = vmatprep.subr.bf16.mxu0 %v3989_v0 }
  0x8a   :  { %3255 = vmatprep.mubr.msk.f32.mxu1 %vm3990_vm0, %v3991_v1  ;;  %3231 = vmatmul.mubr.msk.f32.gmra.mrb[4].mxu0 %vm148_vm1, %v136_v36 }
  0x8b   :  { %3568 = vmatpush3.bf16.msra.mxu1 %v4248_v44  ;;  %3233 = vmatprep.mubr.msk.f32.mxu0 %vm148_vm1, %v137_v42 }
  0x8c   :  { %3569 = vmatprep.subr.bf16.mxu1 %v3989_v0 }
  0x8e   :  { %3234 = vmatmul.mubr.msk.f32.gmra.mrb[6].mxu0 %vm148_vm1, %v138_v48 }
  0x8f   :  { %3571 = vmatpush3.bf16.msra.mxu1 %v4259_v47  ;;  %3266 = vmatprep.mubr.msk.f32.mxu0 %vm3990_vm0, %v3991_v1 }
  0x90   :  { %3578 = vmatprep.subr.bf16.mxu1 %v3989_v0 }
  0x92   :  { %3267 = vmatmul.mubr.f32.vlgmr.msra.gmra.mrb[8].mxu0 %v3991_v1 }
  0x93   :  { %3586 = vmatpush3.bf16.msra.mxu0 %v4248_v44  ;;  %3288 = vmatprep.mubr.msk.f32.mxu0 %vm3990_vm0, %v3991_v1 }
  0x94   :  { %3587 = vmatprep.subr.bf16.mxu0 %v3989_v0 }
  0x97   :  { %3589 = vmatpush3.bf16.msra.mxu0 %v4259_v47 }
  0x98   :  { %3596 = vmatprep.subr.bf16.mxu0 %v3989_v0 }
  0xed   :  { %v4199_v16 = vpop.permute.xlu0 %379 }
 0x155   :  { %v4197_v14 = vpop.f32.mrb[0].mxu0 }
 0x156   :  { %v239_v15 = vpop.f32.mrb[1].mxu0 }
 0x157   :  { %v240_v21 = vadd.f32 %v4203_v20, %v239_v15 }
 0x159   :  { %v4286_v56 = vpop.f32.mrb[2].mxu0 }
 0x15a   :  { %v4288_v57 = vpop.f32.mrb[3].mxu0 }
 0x15c   :  { %v363_v17 = vpop.f32.mrb[0].mxu1 }
 0x15d   :  { %v382_v18 = vadd.f32 %v4199_v16, %v363_v17  ;;  %v3246_v19 = vpop.f32.mrb[1].mxu1  ;;  %v367_v22 = vadd.f32 %v363_v17, %v240_v21  ;;  %v4290_v58 = vpop.f32.mrb[4].mxu0 }
 0x15e   :  { %v4292_v59 = vpop.f32.mrb[5].mxu0 }
 0x15f   :  { %384 = vrot.lane.b32.xlu0 %v382_v18, %s3992_s7  ;;  %v3014_v23 = vmul.f32 -1.442695, %v367_v22 }
 0x161   :  { %3744 = vpow2.f32 %v3014_v23  ;;  %v4294_v60 = vpop.f32.mrb[6].mxu0 }
 0x162   :  { %v4296_v61 = vpop.f32.mrb[7].mxu0 }
 0x165   :  { %v549_v62 = vpop.f32.mrb[8].mxu0 }
 0x166   :  { %v3268_v63 = vpop.f32.mrb[9].mxu0 }
 0x16b   :  { %v3745_v24 = vpop.eup %3744 }
 0x16c   :  { %v371_v25 = vadd.f32 1.0, %v3745_v24  ;;  %v245_v24 = vadd.f32 %v4197_v14, %v4203_v20 }
 0x16e   :  { %3746 = vrcp.f32 %v371_v25 }
 0x178   :  { %v3747_v26 = vpop.eup %3746 }
 0x179   :  { %v394_v50 = vsub.f32 1.0, %v3747_v26  ;;  %v400_v53 = vmul.f32 0.0, %v3747_v26 }
 0x1d1   :  { %v385_v27 = vpop.permute.xlu0 %384 }
 0x1d2   :  { %v387_v28 = vmul.f32 %v3747_v26, %v385_v27 }
 0x1d4   :  { %389 = vrot.lane.b32.xlu1 %v387_v28, %s3992_s7 }
 0x246   :  { %v390_v29 = vpop.permute.xlu1 %389 }
 0x247   :  { %v392_v30 = vadd.f32 %v390_v29, %v240_v21 }
 0x249   :  { %3748 = vtanh.f32 %v392_v30 }
 0x253   :  { %v3749_v49 = vpop.eup %3748 }
 0x254   :  { %396 = vrot.lane.b32.xlu1 %v3749_v49, %s3993_s5 }
 0x258   :  { %565 = vrot.lane.b32.xlu1 %v3019_v52, %s3992_s7 }
 0x2c6   :  { %v397_v51 = vpop.permute.xlu1 %396 }
 0x2c7   :  { %v399_v54 = vmul.f32 %v397_v51, %v394_v50 }
 0x2c9   :  { %v4282_v55 = vadd.f32 %v400_v53, %v399_v54 }
 0x2ca   :  { %v4298_v2 = vpop.permute.xlu1 %565 }
 0x2cb   :  { %409 = vrot.lane.b32.xlu0 %v4282_v55, %s3993_s5  ;;  %v568_v3 = vadd.f32 %v4298_v2, %v549_v62 }
 0x2cd   :  { %570 = vrot.lane.b32.xlu1 %v568_v3, %s3992_s7 }
 0x33d   :  { %v410_v4 = vpop.permute.xlu0 %409 }
 0x33e   :  { %3256 = vmatmul.mubr.msk.f32.vlgmr.msra.gmra.mrb[2].mxu1 %vm293_vm2, %v410_v4 }
 0x33f   :  { %3580 = vmatpush3.bf16.msra.mxu1 %v4173_v8  ;;  %3277 = vmatprep.mubr.msk.f32.mxu1 %vm3990_vm0, %v3991_v1  ;;  %v571_v21 = vpop.permute.xlu1 %570 }
 0x340   :  { %3581 = vmatprep.subr.bf16.mxu1 %v3989_v0 }
 0x343   :  { %3583 = vmatpush3.bf16.msra.mxu1 %v4187_v13 }
 0x344   :  { %3590 = vmatprep.subr.bf16.mxu1 %v3989_v0 }
 0x346   :  { %3278 = vmatmul.mubr.msk.f32.vlgmr.msra.gmra.mrb[4].mxu1 %vm293_vm2, %v410_v4 }
 0x347   :  { %3592 = vmatpush3.bf16.msra.mxu1 %v4227_v37  ;;  %3299 = vmatprep.mubr.msk.f32.mxu1 %vm3990_vm0, %v3991_v1 }
 0x348   :  { %3593 = vmatprep.subr.bf16.mxu1 %v3989_v0 }
 0x34b   :  { %3595 = vmatpush3.bf16.msra.mxu1 %v4246_v43 }
 0x34c   :  { %3602 = vmatprep.subr.bf16.mxu1 %v3989_v0 }
 0x411   :  { %v479_v6 = vpop.f32.mrb[2].mxu1 }
 0x412   :  { %v480_v7 = vadd.f32 %v4316_v5, %v479_v6  ;;  %v3257_v9 = vpop.f32.mrb[3].mxu1 }
 0x414   :  { %v553_v10 = vadd.f32 %v549_v62, %v480_v7 }
 0x416   :  { %v3018_v11 = vmul.f32 -1.442695, %v553_v10 }
 0x418   :  { %3750 = vpow2.f32 %v3018_v11 }
 0x419   :  { %v654_v12 = vpop.f32.mrb[4].mxu1 }
 0x41a   :  { %v665_v15 = vadd.f32 %v654_v12, %v4199_v16  ;;  %v3279_v17 = vpop.f32.mrb[5].mxu1  ;;  %v658_v25 = vadd.f32 %v654_v12, %v245_v24 }
 0x41c   :  { %667 = vrot.lane.b32.xlu0 %v665_v15, %s3992_s7  ;;  %v3021_v26 = vmul.f32 -1.442695, %v658_v25 }
 0x422   :  { %v3751_v18 = vpop.eup %3750 }
 0x423   :  { %v557_v19 = vadd.f32 1.0, %v3751_v18 }
 0x425   :  { %3752 = vrcp.f32 %v557_v19  ;;  %v250_v19 = vadd.f32 %v4203_v20, %v4288_v57 }
 0x426   :  { %3754 = vpow2.f32 %v3021_v26 }
 0x42f   :  { %v3753_v22 = vpop.eup %3752 }
 0x430   :  { %v573_v23 = vmul.f32 %v3753_v22, %v571_v21  ;;  %v3755_v27 = vpop.eup %3754  ;;  %v580_v38 = vsub.f32 1.0, %v3753_v22  ;;  %v586_v40 = vmul.f32 0.0, %v3753_v22 }
 0x431   :  { %v662_v28 = vadd.f32 1.0, %v3755_v27 }
 0x432   :  { %575 = vrot.lane.b32.xlu1 %v573_v23, %s3992_s7 }
 0x433   :  { %3756 = vrcp.f32 %v662_v28 }
 0x43d   :  { %v3757_v29 = vpop.eup %3756 }
 0x43e   :  { %v677_v45 = vsub.f32 1.0, %v3757_v29  ;;  %v683_v48 = vmul.f32 %v3757_v29, %v4282_v55 }
 0x48e   :  { %v668_v30 = vpop.permute.xlu0 %667 }
 0x48f   :  { %v670_v31 = vmul.f32 %v3757_v29, %v668_v30 }
 0x491   :  { %672 = vrot.lane.b32.xlu0 %v670_v31, %s3992_s7 }
 0x4a4   :  { %v576_v32 = vpop.permute.xlu1 %575 }
 0x4a5   :  { %v578_v33 = vadd.f32 %v576_v32, %v480_v7 }
 0x4a7   :  { %3758 = vtanh.f32 %v578_v33 }
 0x4b1   :  { %v3759_v34 = vpop.eup %3758 }
 0x4b2   :  { %582 = vrot.lane.b32.xlu1 %v3759_v34, %s3993_s5 }
 0x503   :  { %v673_v35 = vpop.permute.xlu0 %672 }
 0x504   :  { %v675_v36 = vadd.f32 %v673_v35, %v245_v24 }
 0x506   :  { %3760 = vtanh.f32 %v675_v36 }
 0x510   :  { %v3761_v14 = vpop.eup %3760 }
 0x511   :  { %679 = vrot.lane.b32.xlu0 %v3761_v14, %s3993_s5 }
 0x524   :  { %v583_v39 = vpop.permute.xlu1 %582 }
 0x525   :  { %v585_v41 = vmul.f32 %v583_v39, %v580_v38 }
 0x527   :  { %v4327_v42 = vadd.f32 %v586_v40, %v585_v41 }
 0x529   :  { %761 = vrot.lane.b32.xlu1 %v4327_v42, %s3993_s5 }
 0x583   :  { %v680_v46 = vpop.permute.xlu0 %679 }
 0x584   :  { %v682_v49 = vmul.f32 %v680_v46, %v677_v45 }
 0x586   :  { %v4332_v50 = vadd.f32 %v683_v48, %v682_v49 }
 0x588   :  { %686 = vrot.lane.b32.xlu0 %v4332_v50, %s3993_s5 }
 0x59b   :  { %v762_v51 = vpop.permute.xlu1 %761 }
 0x59c   :  { %3300 = vmatmul.mubr.msk.f32.vlgmr.msra.gmra.mrb[6].mxu1 %vm293_vm2, %v762_v51 }
 0x59d   :  { %3604 = vmatpush3.bf16.msra.mxu1 %v4248_v44  ;;  %3321 = vmatprep.mubr.msk.f32.mxu1 %vm3990_vm0, %v3991_v1 }
 0x59e   :  { %3605 = vmatprep.subr.bf16.mxu1 %v3989_v0 }
 0x5a1   :  { %3607 = vmatpush3.bf16.msra.mxu1 %v4259_v47 }
 0x5a2   :  { %3614 = vmatprep.subr.bf16.mxu1 %v3989_v0 }
 0x5fa   :  { %v687_v52 = vpop.permute.xlu0 %686 }
 0x5fb   :  { %3289 = vmatmul.mubr.msk.f32.vlgmr.msra.gmra.mrb[10].mxu0 %vm293_vm2, %v687_v52 }
 0x5fc   :  { %3598 = vmatpush3.bf16.msra.mxu0 %v4173_v8  ;;  %3310 = vmatprep.mubr.msk.f32.mxu0 %vm3990_vm0, %v3991_v1 }
 0x5fd   :  { %3599 = vmatprep.subr.bf16.mxu0 %v3989_v0 }
 0x600   :  { %3601 = vmatpush3.bf16.msra.mxu0 %v4187_v13 }
 0x601   :  { %3608 = vmatprep.subr.bf16.mxu0 %v3989_v0 }
 0x603   :  { %3311 = vmatmul.mubr.msk.f32.vlgmr.msra.gmra.mrb[12].mxu0 %vm293_vm2, %v687_v52 }
 0x604   :  { %3610 = vmatpush3.bf16.msra.mxu0 %v4227_v37  ;;  %3332 = vmatprep.mubr.msk.f32.mxu0 %vm3990_vm0, %v3991_v1 }
 0x605   :  { %3611 = vmatprep.subr.bf16.mxu0 %v3989_v0 }
 0x608   :  { %3613 = vmatpush3.bf16.msra.mxu0 %v4246_v43 }
 0x609   :  { %3620 = vmatprep.subr.bf16.mxu0 %v3989_v0 }
 0x66f   :  { %v831_v53 = vpop.f32.mrb[6].mxu1 }
 0x670   :  { %v842_v54 = vadd.f32 %v831_v53, %v4298_v2  ;;  %v3301_v55 = vpop.f32.mrb[7].mxu1 }
 0x672   :  { %844 = vrot.lane.b32.xlu1 %v842_v54, %s3992_s7 }
 0x6ce   :  { %v756_v62 = vpop.f32.mrb[10].mxu0 }
 0x6cf   :  { %v757_v63 = vadd.f32 %v4316_v5, %v756_v62  ;;  %v3290_v3 = vpop.f32.mrb[11].mxu0 }
 0x6d1   :  { %v835_v4 = vadd.f32 %v831_v53, %v757_v63 }
 0x6d3   :  { %v3024_v6 = vmul.f32 -1.442695, %v835_v4 }
 0x6d5   :  { %3762 = vpow2.f32 %v3024_v6 }
 0x6d6   :  { %v928_v7 = vpop.f32.mrb[12].mxu0 }
 0x6d7   :  { %v939_v9 = vadd.f32 %v928_v7, %v4199_v16  ;;  %v3312_v10 = vpop.f32.mrb[13].mxu0  ;;  %v932_v21 = vadd.f32 %v928_v7, %v250_v19 }
 0x6d9   :  { %941 = vrot.lane.b32.xlu0 %v939_v9, %s3992_s7  ;;  %v3026_v22 = vmul.f32 -1.442695, %v932_v21 }
 0x6df   :  { %v3763_v11 = vpop.eup %3762 }
 0x6e0   :  { %v839_v12 = vadd.f32 1.0, %v3763_v11  ;;  %v255_v11 = vadd.f32 %v4286_v56, %v4203_v20 }
 0x6e2   :  { %3764 = vrcp.f32 %v839_v12 }
 0x6e3   :  { %3766 = vpow2.f32 %v3026_v22 }
 0x6e4   :  { %v845_v17 = vpop.permute.xlu1 %844 }
 0x6ec   :  { %v3765_v15 = vpop.eup %3764 }
 0x6ed   :  { %v847_v18 = vmul.f32 %v3765_v15, %v845_v17  ;;  %v3767_v23 = vpop.eup %3766  ;;  %v854_v33 = vsub.f32 1.0, %v3765_v15  ;;  %v860_v35 = vmul.f32 %v3765_v15, %v4327_v42 }
 0x6ee   :  { %v936_v24 = vadd.f32 1.0, %v3767_v23 }
 0x6ef   :  { %849 = vrot.lane.b32.xlu1 %v847_v18, %s3992_s7 }
 0x6f0   :  { %3768 = vrcp.f32 %v936_v24 }
 0x6fa   :  { %v3769_v25 = vpop.eup %3768 }
 0x6fb   :  { %v951_v38 = vsub.f32 1.0, %v3769_v25  ;;  %v957_v40 = vmul.f32 %v3769_v25, %v4332_v50 }
 0x74b   :  { %v942_v26 = vpop.permute.xlu0 %941 }
 0x74c   :  { %v944_v27 = vmul.f32 %v3769_v25, %v942_v26 }
 0x74e   :  { %946 = vrot.lane.b32.xlu0 %v944_v27, %s3992_s7 }
 0x761   :  { %v850_v28 = vpop.permute.xlu1 %849 }
 0x762   :  { %v852_v29 = vadd.f32 %v850_v28, %v757_v63 }
 0x764   :  { %3770 = vtanh.f32 %v852_v29 }
 0x76e   :  { %v3771_v30 = vpop.eup %3770 }
 0x76f   :  { %856 = vrot.lane.b32.xlu1 %v3771_v30, %s3993_s5 }
 0x7c0   :  { %v947_v31 = vpop.permute.xlu0 %946 }
 0x7c1   :  { %v949_v32 = vadd.f32 %v947_v31, %v250_v19 }
 0x7c3   :  { %3772 = vtanh.f32 %v949_v32 }
 0x7cd   :  { %v3773_v57 = vpop.eup %3772 }
 0x7ce   :  { %953 = vrot.lane.b32.xlu0 %v3773_v57, %s3993_s5 }
 0x7e1   :  { %v857_v34 = vpop.permute.xlu1 %856 }
 0x7e2   :  { %v859_v36 = vmul.f32 %v857_v34, %v854_v33 }
 0x7e4   :  { %v4369_v14 = vadd.f32 %v860_v35, %v859_v36 }
 0x7e6   :  { %1035 = vrot.lane.b32.xlu1 %v4369_v14, %s3993_s5 }
 0x840   :  { %v954_v39 = vpop.permute.xlu0 %953 }
 0x841   :  { %v956_v41 = vmul.f32 %v954_v39, %v951_v38 }
 0x843   :  { %v4374_v45 = vadd.f32 %v957_v40, %v956_v41 }
 0x845   :  { %960 = vrot.lane.b32.xlu0 %v4374_v45, %s3993_s5 }
 0x858   :  { %v1036_v46 = vpop.permute.xlu1 %1035 }
 0x859   :  { %3333 = vmatmul.mubr.msk.f32.vlgmr.msra.gmra.mrb[14].mxu0 %vm293_vm2, %v1036_v46 }
 0x85a   :  { %3622 = vmatpush3.bf16.msra.mxu0 %v4248_v44  ;;  %3354 = vmatprep.mubr.msk.f32.mxu0 %vm3990_vm0, %v3991_v1 }
 0x85b   :  { %3623 = vmatprep.subr.bf16.mxu0 %v3989_v0 }
 0x85e   :  { %3625 = vmatpush3.bf16.msra.mxu0 %v4259_v47 }
 0x85f   :  { %3632 = vmatprep.subr.bf16.mxu0 %v3989_v0 }
 0x8b7   :  { %v961_v42 = vpop.permute.xlu0 %960 }
 0x8b8   :  { %3322 = vmatmul.mubr.msk.f32.vlgmr.msra.gmra.mrb[8].mxu1 %vm293_vm2, %v961_v42 }
 0x8b9   :  { %3616 = vmatpush3.bf16.msra.mxu1 %v4173_v8  ;;  %3343 = vmatprep.mubr.msk.f32.mxu1 %vm3990_vm0, %v3991_v1 }
 0x8ba   :  { %3617 = vmatprep.subr.bf16.mxu1 %v3989_v0 }
 0x8bd   :  { %3619 = vmatpush3.bf16.msra.mxu1 %v4187_v13 }
 0x8be   :  { %3626 = vmatprep.subr.bf16.mxu1 %v3989_v0 }
 0x8c0   :  { %3344 = vmatmul.mubr.msk.f32.vlgmr.msra.gmra.mrb[10].mxu1 %vm293_vm2, %v961_v42 }
 0x8c1   :  { %3628 = vmatpush3.bf16.msra.mxu1 %v4227_v37  ;;  %3365 = vmatprep.mubr.msk.f32.mxu1 %vm3990_vm0, %v3991_v1 }
 0x8c2   :  { %3629 = vmatprep.subr.bf16.mxu1 %v3989_v0 }
 0x8c5   :  { %3631 = vmatpush3.bf16.msra.mxu1 %v4246_v43 }
 0x8c6   :  { %3638 = vmatprep.subr.bf16.mxu1 %v3989_v0 }
 0x92c   :  { %v1105_v48 = vpop.f32.mrb[14].mxu0 }
 0x92d   :  { %v1116_v49 = vadd.f32 %v1105_v48, %v4298_v2  ;;  %v3334_v50 = vpop.f32.mrb[15].mxu0 }
 0x92f   :  { %1118 = vrot.lane.b32.xlu0 %v1116_v49, %s3992_s7 }
 0x98b   :  { %v1030_v51 = vpop.f32.mrb[8].mxu1 }
 0x98c   :  { %v1031_v52 = vadd.f32 %v4316_v5, %v1030_v51  ;;  %v3323_v53 = vpop.f32.mrb[9].mxu1 }
 0x98e   :  { %v1109_v54 = vadd.f32 %v1105_v48, %v1031_v52 }
 0x990   :  { %v3029_v55 = vmul.f32 -1.442695, %v1109_v54 }
 0x992   :  { %3774 = vpow2.f32 %v3029_v55 }
 0x993   :  { %v1202_v62 = vpop.f32.mrb[10].mxu1 }
 0x994   :  { %v1213_v63 = vadd.f32 %v1202_v62, %v4199_v16  ;;  %v3345_v3 = vpop.f32.mrb[11].mxu1  ;;  %v1206_v12 = vadd.f32 %v1202_v62, %v255_v11 }
 0x995   :  { %v260_v3 = vadd.f32 %v4203_v20, %v4292_v59 }
 0x996   :  { %1215 = vrot.lane.b32.xlu1 %v1213_v63, %s3992_s7  ;;  %v3031_v15 = vmul.f32 -1.442695, %v1206_v12 }
 0x99c   :  { %v3775_v4 = vpop.eup %3774 }
 0x99d   :  { %v1113_v6 = vadd.f32 1.0, %v3775_v4 }
 0x99f   :  { %3776 = vrcp.f32 %v1113_v6 }
 0x9a0   :  { %3778 = vpow2.f32 %v3031_v15 }
 0x9a1   :  { %v1119_v9 = vpop.permute.xlu0 %1118 }
 0x9a9   :  { %v3777_v7 = vpop.eup %3776 }
 0x9aa   :  { %v1121_v10 = vmul.f32 %v3777_v7, %v1119_v9  ;;  %v3779_v17 = vpop.eup %3778  ;;  %v1128_v28 = vsub.f32 1.0, %v3777_v7  ;;  %v1134_v30 = vmul.f32 %v3777_v7, %v4369_v14 }
 0x9ab   :  { %v1210_v18 = vadd.f32 1.0, %v3779_v17 }
 0x9ac   :  { %1123 = vrot.lane.b32.xlu0 %v1121_v10, %s3992_s7 }
 0x9ad   :  { %3780 = vrcp.f32 %v1210_v18 }
 0x9b7   :  { %v3781_v19 = vpop.eup %3780 }
 0x9b8   :  { %v1225_v57 = vsub.f32 1.0, %v3781_v19  ;;  %v1231_v34 = vmul.f32 %v3781_v19, %v4374_v45 }
 0xa08   :  { %v1216_v21 = vpop.permute.xlu1 %1215 }
 0xa09   :  { %v1218_v22 = vmul.f32 %v3781_v19, %v1216_v21 }
 0xa0b   :  { %1220 = vrot.lane.b32.xlu1 %v1218_v22, %s3992_s7 }
 0xa1e   :  { %v1124_v23 = vpop.permute.xlu0 %1123 }
 0xa1f   :  { %v1126_v24 = vadd.f32 %v1124_v23, %v1031_v52 }
 0xa21   :  { %3782 = vtanh.f32 %v1126_v24 }
 0xa2b   :  { %v3783_v25 = vpop.eup %3782 }
 0xa2c   :  { %1130 = vrot.lane.b32.xlu0 %v3783_v25, %s3993_s5 }
 0xa7d   :  { %v1221_v26 = vpop.permute.xlu1 %1220 }
 0xa7e   :  { %v1223_v27 = vadd.f32 %v1221_v26, %v255_v11 }
 0xa80   :  { %3784 = vtanh.f32 %v1223_v27 }
 0xa8a   :  { %v3785_v56 = vpop.eup %3784 }
 0xa8b   :  { %1227 = vrot.lane.b32.xlu1 %v3785_v56, %s3993_s5 }
 0xa9e   :  { %v1131_v29 = vpop.permute.xlu0 %1130 }
 0xa9f   :  { %v1133_v31 = vmul.f32 %v1131_v29, %v1128_v28 }
 0xaa1   :  { %v4411_v32 = vadd.f32 %v1134_v30, %v1133_v31 }
 0xaa3   :  { %1309 = vrot.lane.b32.xlu0 %v4411_v32, %s3993_s5 }
 0xafd   :  { %v1228_v33 = vpop.permute.xlu1 %1227 }
 0xafe   :  { %v1230_v35 = vmul.f32 %v1228_v33, %v1225_v57 }
 0xb00   :  { %v4416_v36 = vadd.f32 %v1231_v34, %v1230_v35 }
 0xb02   :  { %1234 = vrot.lane.b32.xlu1 %v4416_v36, %s3993_s5 }
 0xb15   :  { %v1310_v38 = vpop.permute.xlu0 %1309 }
 0xb16   :  { %3366 = vmatmul.mubr.msk.f32.vlgmr.msra.gmra.mrb[12].mxu1 %vm293_vm2, %v1310_v38 }
 0xb17   :  { %3640 = vmatpush3.bf16.msra.mxu1 %v4248_v44  ;;  %3387 = vmatprep.mubr.msk.f32.mxu1 %vm3990_vm0, %v3991_v1 }
 0xb18   :  { %3641 = vmatprep.subr.bf16.mxu1 %v3989_v0 }
 0xb1b   :  { %3643 = vmatpush3.bf16.msra.mxu1 %v4259_v47 }
 0xb1c   :  { %3650 = vmatprep.subr.bf16.mxu1 %v3989_v0 }
 0xb74   :  { %v1235_v14 = vpop.permute.xlu1 %1234 }
 0xb75   :  { %3355 = vmatmul.mubr.msk.f32.vlgmr.msra.gmra.mrb[16].mxu0 %vm293_vm2, %v1235_v14 }
 0xb76   :  { %3634 = vmatpush3.bf16.msra.mxu0 %v4173_v8  ;;  %3376 = vmatprep.mubr.msk.f32.mxu0 %vm3990_vm0, %v3991_v1 }
 0xb77   :  { %3635 = vmatprep.subr.bf16.mxu0 %v3989_v0 }
 0xb7a   :  { %3637 = vmatpush3.bf16.msra.mxu0 %v4187_v13 }
 0xb7b   :  { %3644 = vmatprep.subr.bf16.mxu0 %v3989_v0 }
 0xb7d   :  { %3377 = vmatmul.mubr.msk.f32.vlgmr.msra.gmra.mrb[18].mxu0 %vm293_vm2, %v1235_v14 }
 0xb7e   :  { %3646 = vmatpush3.bf16.msra.mxu0 %v4227_v37  ;;  %3398 = vmatprep.mubr.msk.f32.mxu0 %vm3990_vm0, %v3991_v1 }
 0xb7f   :  { %3647 = vmatprep.subr.bf16.mxu0 %v3989_v0 }
 0xb82   :  { %3649 = vmatpush3.bf16.msra.mxu0 %v4246_v43 }
 0xb83   :  { %3656 = vmatprep.subr.bf16.mxu0 %v3989_v0 }
 0xbe9   :  { %v1379_v39 = vpop.f32.mrb[12].mxu1 }
 0xbea   :  { %v1390_v40 = vadd.f32 %v1379_v39, %v4298_v2  ;;  %v3367_v41 = vpop.f32.mrb[13].mxu1 }
 0xbec   :  { %1392 = vrot.lane.b32.xlu0 %v1390_v40, %s3992_s7 }
 0xc48   :  { %v1304_v45 = vpop.f32.mrb[16].mxu0 }
 0xc49   :  { %v1305_v46 = vadd.f32 %v4316_v5, %v1304_v45  ;;  %v3356_v42 = vpop.f32.mrb[17].mxu0 }
 0xc4b   :  { %v1383_v48 = vadd.f32 %v1379_v39, %v1305_v46 }
 0xc4d   :  { %v3034_v49 = vmul.f32 -1.442695, %v1383_v48 }
 0xc4f   :  { %3786 = vpow2.f32 %v3034_v49 }
 0xc50   :  { %v1476_v50 = vpop.f32.mrb[18].mxu0 }
 0xc51   :  { %v1487_v51 = vadd.f32 %v1476_v50, %v4199_v16  ;;  %v3378_v52 = vpop.f32.mrb[19].mxu0  ;;  %v1480_v4 = vadd.f32 %v1476_v50, %v260_v3 }
 0xc53   :  { %1489 = vrot.lane.b32.xlu1 %v1487_v51, %s3992_s7  ;;  %v3036_v6 = vmul.f32 -1.442695, %v1480_v4  ;;  %v265_v51 = vadd.f32 %v4290_v58, %v4203_v20 }
 0xc59   :  { %v3787_v53 = vpop.eup %3786 }
 0xc5a   :  { %v1387_v54 = vadd.f32 1.0, %v3787_v53 }
 0xc5c   :  { %3788 = vrcp.f32 %v1387_v54 }
 0xc5d   :  { %3790 = vpow2.f32 %v3036_v6 }
 0xc5e   :  { %v1393_v62 = vpop.permute.xlu0 %1392 }
 0xc66   :  { %v3789_v55 = vpop.eup %3788 }
 0xc67   :  { %v1395_v63 = vmul.f32 %v3789_v55, %v1393_v62  ;;  %v3791_v7 = vpop.eup %3790  ;;  %v1402_v22 = vsub.f32 1.0, %v3789_v55  ;;  %v1408_v24 = vmul.f32 %v3789_v55, %v4411_v32 }
 0xc68   :  { %v1484_v9 = vadd.f32 1.0, %v3791_v7 }
 0xc69   :  { %1397 = vrot.lane.b32.xlu0 %v1395_v63, %s3992_s7 }
 0xc6a   :  { %3792 = vrcp.f32 %v1484_v9 }
 0xc74   :  { %v3793_v10 = vpop.eup %3792 }
 0xc75   :  { %v1499_v27 = vsub.f32 1.0, %v3793_v10  ;;  %v1505_v28 = vmul.f32 %v3793_v10, %v4416_v36 }
 0xcc5   :  { %v1490_v11 = vpop.permute.xlu1 %1489 }
 0xcc6   :  { %v1492_v12 = vmul.f32 %v3793_v10, %v1490_v11 }
 0xcc8   :  { %1494 = vrot.lane.b32.xlu1 %v1492_v12, %s3992_s7 }
 0xcdb   :  { %v1398_v15 = vpop.permute.xlu0 %1397 }
 0xcdc   :  { %v1400_v17 = vadd.f32 %v1398_v15, %v1305_v46 }
 0xcde   :  { %3794 = vtanh.f32 %v1400_v17 }
 0xce8   :  { %v3795_v18 = vpop.eup %3794 }
 0xce9   :  { %1404 = vrot.lane.b32.xlu0 %v3795_v18, %s3993_s5 }
 0xd3a   :  { %v1495_v19 = vpop.permute.xlu1 %1494 }
 0xd3b   :  { %v1497_v21 = vadd.f32 %v1495_v19, %v260_v3 }
 0xd3d   :  { %3796 = vtanh.f32 %v1497_v21 }
 0xd47   :  { %v3797_v59 = vpop.eup %3796 }
 0xd48   :  { %1501 = vrot.lane.b32.xlu1 %v3797_v59, %s3993_s5 }
 0xd5b   :  { %v1405_v23 = vpop.permute.xlu0 %1404 }
 0xd5c   :  { %v1407_v25 = vmul.f32 %v1405_v23, %v1402_v22 }
 0xd5e   :  { %v4453_v26 = vadd.f32 %v1408_v24, %v1407_v25 }
 0xd60   :  { %1583 = vrot.lane.b32.xlu0 %v4453_v26, %s3993_s5 }
 0xdba   :  { %v1502_v56 = vpop.permute.xlu1 %1501 }
 0xdbb   :  { %v1504_v29 = vmul.f32 %v1502_v56, %v1499_v27 }
 0xdbd   :  { %v4458_v30 = vadd.f32 %v1505_v28, %v1504_v29 }
 0xdbf   :  { %1508 = vrot.lane.b32.xlu1 %v4458_v30, %s3993_s5 }
 0xdd2   :  { %v1584_v31 = vpop.permute.xlu0 %1583 }
 0xdd3   :  { %3399 = vmatmul.mubr.msk.f32.vlgmr.msra.gmra.mrb[20].mxu0 %vm293_vm2, %v1584_v31 }
 0xdd4   :  { %3658 = vmatpush3.bf16.msra.mxu0 %v4248_v44  ;;  %3420 = vmatprep.mubr.msk.f32.mxu0 %vm3990_vm0, %v3991_v1 }
 0xdd5   :  { %3659 = vmatprep.subr.bf16.mxu0 %v3989_v0 }
 0xdd8   :  { %3661 = vmatpush3.bf16.msra.mxu0 %v4259_v47 }
 0xdd9   :  { %3668 = vmatprep.subr.bf16.mxu0 %v3989_v0 }
 0xe31   :  { %v1509_v32 = vpop.permute.xlu1 %1508 }
 0xe32   :  { %3388 = vmatmul.mubr.msk.f32.vlgmr.msra.gmra.mrb[14].mxu1 %vm293_vm2, %v1509_v32 }
 0xe33   :  { %3652 = vmatpush3.bf16.msra.mxu1 %v4173_v8  ;;  %3409 = vmatprep.mubr.msk.f32.mxu1 %vm3990_vm0, %v3991_v1 }
 0xe34   :  { %3653 = vmatprep.subr.bf16.mxu1 %v3989_v0 }
 0xe37   :  { %3655 = vmatpush3.bf16.msra.mxu1 %v4187_v13 }
 0xe38   :  { %3662 = vmatprep.subr.bf16.mxu1 %v3989_v0 }
 0xe3a   :  { %3410 = vmatmul.mubr.msk.f32.vlgmr.msra.gmra.mrb[16].mxu1 %vm293_vm2, %v1509_v32 }
 0xe3b   :  { %3664 = vmatpush3.bf16.msra.mxu1 %v4227_v37  ;;  %3431 = vmatprep.mubr.msk.f32.mxu1 %vm3990_vm0, %v3991_v1 }
 0xe3c   :  { %3665 = vmatprep.subr.bf16.mxu1 %v3989_v0 }
 0xe3f   :  { %3667 = vmatpush3.bf16.msra.mxu1 %v4246_v43 }
 0xe40   :  { %3674 = vmatprep.subr.bf16.mxu1 %v3989_v0 }
 0xea6   :  { %v1653_v57 = vpop.f32.mrb[20].mxu0 }
 0xea7   :  { %v1664_v33 = vadd.f32 %v1653_v57, %v4298_v2  ;;  %v3400_v34 = vpop.f32.mrb[21].mxu0 }
 0xea9   :  { %1666 = vrot.lane.b32.xlu0 %v1664_v33, %s3992_s7 }
 0xf05   :  { %v1578_v35 = vpop.f32.mrb[14].mxu1 }
 0xf06   :  { %v1579_v36 = vadd.f32 %v4316_v5, %v1578_v35  ;;  %v3389_v38 = vpop.f32.mrb[15].mxu1 }
 0xf08   :  { %v1657_v14 = vadd.f32 %v1653_v57, %v1579_v36 }
 0xf0a   :  { %v3039_v39 = vmul.f32 -1.442695, %v1657_v14 }
 0xf0c   :  { %3798 = vpow2.f32 %v3039_v39 }
 0xf0d   :  { %v1750_v40 = vpop.f32.mrb[16].mxu1 }
 0xf0e   :  { %v1761_v41 = vadd.f32 %v1750_v40, %v4199_v16  ;;  %v3411_v45 = vpop.f32.mrb[17].mxu1  ;;  %v1754_v52 = vadd.f32 %v1750_v40, %v265_v51  ;;  %v270_v40 = vadd.f32 %v4203_v20, %v4296_v61 }
 0xf10   :  { %1763 = vrot.lane.b32.xlu1 %v1761_v41, %s3992_s7  ;;  %v3041_v53 = vmul.f32 -1.442695, %v1754_v52 }
 0xf16   :  { %v3799_v46 = vpop.eup %3798 }
 0xf17   :  { %v1661_v42 = vadd.f32 1.0, %v3799_v46 }
 0xf19   :  { %3800 = vrcp.f32 %v1661_v42 }
 0xf1a   :  { %3802 = vpow2.f32 %v3041_v53 }
 0xf1b   :  { %v1667_v49 = vpop.permute.xlu0 %1666 }
 0xf23   :  { %v3801_v48 = vpop.eup %3800 }
 0xf24   :  { %v1669_v50 = vmul.f32 %v3801_v48, %v1667_v49  ;;  %v3803_v54 = vpop.eup %3802  ;;  %v1676_v11 = vsub.f32 1.0, %v3801_v48  ;;  %v1682_v15 = vmul.f32 %v3801_v48, %v4453_v26 }
 0xf25   :  { %v1758_v55 = vadd.f32 1.0, %v3803_v54 }
 0xf26   :  { %1671 = vrot.lane.b32.xlu0 %v1669_v50, %s3992_s7 }
 0xf27   :  { %3804 = vrcp.f32 %v1758_v55 }
 0xf31   :  { %v3805_v62 = vpop.eup %3804 }
 0xf32   :  { %v1773_v19 = vsub.f32 1.0, %v3805_v62  ;;  %v1779_v59 = vmul.f32 %v3805_v62, %v4458_v30 }
 0xf82   :  { %v1764_v63 = vpop.permute.xlu1 %1763 }
 0xf83   :  { %v1766_v3 = vmul.f32 %v3805_v62, %v1764_v63 }
 0xf85   :  { %1768 = vrot.lane.b32.xlu1 %v1766_v3, %s3992_s7 }
 0xf98   :  { %v1672_v4 = vpop.permute.xlu0 %1671 }
 0xf99   :  { %v1674_v6 = vadd.f32 %v1672_v4, %v1579_v36 }
 0xf9b   :  { %3806 = vtanh.f32 %v1674_v6 }
 0xfa5   :  { %v3807_v7 = vpop.eup %3806 }
 0xfa6   :  { %1678 = vrot.lane.b32.xlu0 %v3807_v7, %s3993_s5 }
 0xff7   :  { %v1769_v9 = vpop.permute.xlu1 %1768 }
 0xff8   :  { %v1771_v10 = vadd.f32 %v1769_v9, %v265_v51 }
 0xffa   :  { %3808 = vtanh.f32 %v1771_v10 }
0x1004   :  { %v3809_v58 = vpop.eup %3808 }
0x1005   :  { %1775 = vrot.lane.b32.xlu1 %v3809_v58, %s3993_s5 }
0x1018   :  { %v1679_v12 = vpop.permute.xlu0 %1678 }
0x1019   :  { %v1681_v17 = vmul.f32 %v1679_v12, %v1676_v11 }
0x101b   :  { %v4495_v18 = vadd.f32 %v1682_v15, %v1681_v17 }
0x101d   :  { %1857 = vrot.lane.b32.xlu0 %v4495_v18, %s3993_s5 }
0x1077   :  { %v1776_v21 = vpop.permute.xlu1 %1775 }
0x1078   :  { %v1778_v22 = vmul.f32 %v1776_v21, %v1773_v19 }
0x107a   :  { %v4500_v23 = vadd.f32 %v1779_v59, %v1778_v22 }
0x107c   :  { %1782 = vrot.lane.b32.xlu1 %v4500_v23, %s3993_s5 }
0x108f   :  { %v1858_v24 = vpop.permute.xlu0 %1857 }
0x1090   :  { %3432 = vmatmul.mubr.msk.f32.vlgmr.msra.gmra.mrb[18].mxu1 %vm293_vm2, %v1858_v24 }
0x1091   :  { %3676 = vmatpush3.bf16.msra.mxu1 %v4248_v44  ;;  %3453 = vmatprep.mubr.msk.f32.mxu1 %vm3990_vm0, %v3991_v1 }
0x1092   :  { %3677 = vmatprep.subr.bf16.mxu1 %v3989_v0 }
0x1095   :  { %3679 = vmatpush3.bf16.msra.mxu1 %v4259_v47 }
0x1096   :  { %3686 = vmatprep.subr.bf16.mxu1 %v3989_v0 }
0x10ee   :  { %v1783_v25 = vpop.permute.xlu1 %1782 }
0x10ef   :  { %3421 = vmatmul.mubr.msk.f32.vlgmr.msra.gmra.mrb[22].mxu0 %vm293_vm2, %v1783_v25 }
0x10f0   :  { %3670 = vmatpush3.bf16.msra.mxu0 %v4173_v8  ;;  %3442 = vmatprep.mubr.msk.f32.mxu0 %vm3990_vm0, %v3991_v1 }
0x10f1   :  { %3671 = vmatprep.subr.bf16.mxu0 %v3989_v0 }
0x10f4   :  { %3673 = vmatpush3.bf16.msra.mxu0 %v4187_v13 }
0x10f5   :  { %3680 = vmatprep.subr.bf16.mxu0 %v3989_v0 }
0x10f7   :  { %3443 = vmatmul.mubr.msk.f32.vlgmr.msra.gmra.mrb[24].mxu0 %vm293_vm2, %v1783_v25 }
0x10f8   :  { %3682 = vmatpush3.bf16.msra.mxu0 %v4227_v37  ;;  %3464 = vmatprep.mubr.msk.f32.mxu0 %vm3990_vm0, %v3991_v1 }
0x10f9   :  { %3683 = vmatprep.subr.bf16.mxu0 %v3989_v0 }
0x10fc   :  { %3685 = vmatpush3.bf16.msra.mxu0 %v4246_v43 }
0x10fd   :  { %3692 = vmatprep.subr.bf16.mxu0 %v3989_v0 }
0x1163   :  { %v1927_v26 = vpop.f32.mrb[18].mxu1 }
0x1164   :  { %v1938_v27 = vadd.f32 %v1927_v26, %v4298_v2  ;;  %v3433_v56 = vpop.f32.mrb[19].mxu1 }
0x1166   :  { %1940 = vrot.lane.b32.xlu0 %v1938_v27, %s3992_s7 }
0x11c2   :  { %v1852_v28 = vpop.f32.mrb[22].mxu0 }
0x11c3   :  { %v1853_v29 = vadd.f32 %v4316_v5, %v1852_v28  ;;  %v3422_v30 = vpop.f32.mrb[23].mxu0 }
0x11c5   :  { %v1931_v31 = vadd.f32 %v1927_v26, %v1853_v29  ;;  %v3840_v26 = vld [vmem:[#allocation4] ss:$0 sm:$0xff] }
0x11c6   :  { %v275_v27 = vadd.f32 %v3840_v26, %v4294_v60  ;;  %v2666_v26 = vld [vmem:[%s4686_s12 + $0x18] sm:$0xff] }
0x11c7   :  { %v3044_v32 = vmul.f32 -1.442695, %v1931_v31 }
0x11c9   :  { %3810 = vpow2.f32 %v3044_v32 }
0x11ca   :  { %v2024_v57 = vpop.f32.mrb[24].mxu0 }
0x11cb   :  { %v2035_v33 = vadd.f32 %v2024_v57, %v4199_v16  ;;  %v3444_v34 = vpop.f32.mrb[25].mxu0  ;;  %v2028_v41 = vadd.f32 %v2024_v57, %v270_v40 }
0x11cd   :  { %2037 = vrot.lane.b32.xlu1 %v2035_v33, %s3992_s7  ;;  %v3046_v45 = vmul.f32 -1.442695, %v2028_v41 }
0x11d3   :  { %v3811_v35 = vpop.eup %3810 }
0x11d4   :  { %v1935_v36 = vadd.f32 1.0, %v3811_v35 }
0x11d6   :  { %3812 = vrcp.f32 %v1935_v36 }
0x11d7   :  { %3814 = vpow2.f32 %v3046_v45 }
0x11d8   :  { %v1941_v14 = vpop.permute.xlu0 %1940 }
0x11e0   :  { %v3813_v38 = vpop.eup %3812 }
0x11e1   :  { %v1943_v39 = vmul.f32 %v3813_v38, %v1941_v14  ;;  %v3815_v46 = vpop.eup %3814  ;;  %v1950_v61 = vsub.f32 1.0, %v3813_v38  ;;  %v1956_v63 = vmul.f32 %v3813_v38, %v4495_v18 }
0x11e2   :  { %v2032_v42 = vadd.f32 1.0, %v3815_v46 }
0x11e3   :  { %1945 = vrot.lane.b32.xlu0 %v1943_v39, %s3992_s7 }
0x11e4   :  { %3816 = vrcp.f32 %v2032_v42 }
0x11ee   :  { %v3817_v48 = vpop.eup %3816 }
0x11ef   :  { %v2047_v6 = vsub.f32 1.0, %v3817_v48  ;;  %v2053_v9 = vmul.f32 %v3817_v48, %v4500_v23 }
0x123f   :  { %v2038_v49 = vpop.permute.xlu1 %2037 }
0x1240   :  { %v2040_v50 = vmul.f32 %v3817_v48, %v2038_v49 }
0x1242   :  { %2042 = vrot.lane.b32.xlu1 %v2040_v50, %s3992_s7 }
0x1255   :  { %v1946_v51 = vpop.permute.xlu0 %1945 }
0x1256   :  { %v1948_v52 = vadd.f32 %v1946_v51, %v1853_v29 }
0x1258   :  { %3818 = vtanh.f32 %v1948_v52 }
0x1262   :  { %v3819_v53 = vpop.eup %3818 }
0x1263   :  { %1952 = vrot.lane.b32.xlu0 %v3819_v53, %s3993_s5 }
0x12b4   :  { %v2043_v54 = vpop.permute.xlu1 %2042 }
0x12b5   :  { %v2045_v55 = vadd.f32 %v2043_v54, %v270_v40 }
0x12b7   :  { %3820 = vtanh.f32 %v2045_v55 }
0x12c1   :  { %v3821_v20 = vpop.eup %3820 }
0x12c2   :  { %2049 = vrot.lane.b32.xlu1 %v3821_v20, %s3993_s5 }
0x12d5   :  { %v1953_v62 = vpop.permute.xlu0 %1952 }
0x12d6   :  { %v1955_v3 = vmul.f32 %v1953_v62, %v1950_v61 }
0x12d8   :  { %v4537_v4 = vadd.f32 %v1956_v63, %v1955_v3 }
0x12da   :  { %2131 = vrot.lane.b32.xlu0 %v4537_v4, %s3993_s5 }
0x1334   :  { %v2050_v7 = vpop.permute.xlu1 %2049 }
0x1335   :  { %v2052_v10 = vmul.f32 %v2050_v7, %v2047_v6 }
0x1337   :  { %v4542_v58 = vadd.f32 %v2053_v9, %v2052_v10 }
0x1339   :  { %2056 = vrot.lane.b32.xlu1 %v4542_v58, %s3993_s5 }
0x134c   :  { %v2132_v11 = vpop.permute.xlu0 %2131 }
0x134d   :  { %3465 = vmatmul.mubr.msk.f32.vlgmr.msra.gmra.mrb[26].mxu0 %vm293_vm2, %v2132_v11 }
0x134e   :  { %3694 = vmatpush3.bf16.msra.mxu0 %v4248_v44  ;;  %3486 = vmatprep.mubr.msk.f32.mxu0 %vm3990_vm0, %v3991_v1 }
0x134f   :  { %3695 = vmatprep.subr.bf16.mxu0 %v3989_v0 }
0x1352   :  { %3697 = vmatpush3.bf16.msra.mxu0 %v4259_v47 }
0x1353   :  { %3704 = vmatprep.subr.bf16.mxu0 %v3989_v0 }
0x13ab   :  { %v2057_v12 = vpop.permute.xlu1 %2056 }
0x13ac   :  { %3454 = vmatmul.mubr.msk.f32.vlgmr.msra.gmra.mrb[20].mxu1 %vm293_vm2, %v2057_v12 }
0x13ad   :  { %3688 = vmatpush3.bf16.msra.mxu1 %v4173_v8  ;;  %3475 = vmatprep.mubr.msk.f32.mxu1 %vm3990_vm0, %v3991_v1 }
0x13ae   :  { %3689 = vmatprep.subr.bf16.mxu1 %v3989_v0 }
0x13b1   :  { %3691 = vmatpush3.bf16.msra.mxu1 %v4187_v13 }
0x13b2   :  { %3698 = vmatprep.subr.bf16.mxu1 %v3989_v0 }
0x13b4   :  { %3476 = vmatmul.mubr.msk.f32.vlgmr.msra.gmra.mrb[22].mxu1 %vm293_vm2, %v2057_v12 }
0x13b5   :  { %3700 = vmatpush3.bf16.msra.mxu1 %v4227_v37  ;;  %3497 = vmatprep.mubr.msk.f32.mxu1 %vm3990_vm0, %v3991_v1 }
0x13b6   :  { %3701 = vmatprep.subr.bf16.mxu1 %v3989_v0 }
0x13b9   :  { %3703 = vmatpush3.bf16.msra.mxu1 %v4246_v43 }
0x13ba   :  { %3710 = vmatprep.subr.bf16.mxu1 %v3989_v0 }
0x1420   :  { %v2201_v8 = vpop.f32.mrb[26].mxu0 }
0x1421   :  { %v2212_v44 = vadd.f32 %v2201_v8, %v4298_v2  ;;  %v3466_v47 = vpop.f32.mrb[27].mxu0 }
0x1422   :  { %v2663_v47 = vld [vmem:[%s4686_s12] sm:$0xff] }
0x1423   :  { %2214 = vrot.lane.b32.xlu0 %v2212_v44, %s3992_s7 }
0x147f   :  { %v2126_v13 = vpop.f32.mrb[20].mxu1 }
0x1480   :  { %v2127_v15 = vadd.f32 %v4316_v5, %v2126_v13  ;;  %v3455_v17 = vpop.f32.mrb[21].mxu1  ;;  %v2664_v13 = vld [vmem:[%s4686_s12 + $0x8] sm:$0xff] }
0x1482   :  { %v2205_v37 = vadd.f32 %v2201_v8, %v2127_v15 }
0x1484   :  { %v3049_v18 = vmul.f32 -1.442695, %v2205_v37 }
0x1486   :  { %3822 = vpow2.f32 %v3049_v18  ;;  %v2506_v18 = vld [vmem:[%s4683_s9] sm:$0xff] }
0x1487   :  { %v2298_v19 = vpop.f32.mrb[22].mxu1 }
0x1488   :  { %v2309_v21 = vadd.f32 %v2298_v19, %v4199_v16  ;;  %v3477_v59 = vpop.f32.mrb[23].mxu1  ;;  %v2302_v56 = vadd.f32 %v2298_v19, %v275_v27  ;;  %v2659_v19 = vld [vmem:[%s4685_s11] sm:$0xff] }
0x1489   :  { %v2585_v59 = vld [vmem:[#allocation10] sm:$0xff] }
0x148a   :  { %2311 = vrot.lane.b32.xlu1 %v2309_v21, %s3992_s7  ;;  %v3051_v28 = vmul.f32 -1.442695, %v2302_v56  ;;  %v2660_v21 = vld [vmem:[%s4685_s11 + $0x8] sm:$0xff] }
0x1490   :  { %v3823_v43 = vpop.eup %3822 }
0x1491   :  { %v2209_v22 = vadd.f32 1.0, %v3823_v43  ;;  %v3717_v43 = vpack.c.bf16 %v2660_v21, %v2659_v19 }
0x1493   :  { %3824 = vrcp.f32 %v2209_v22  ;;  %v2661_v22 = vld [vmem:[%s4685_s11 + $0x10] sm:$0xff] }
0x1494   :  { %3826 = vpow2.f32 %v3051_v28 }
0x1495   :  { %v2215_v24 = vpop.permute.xlu0 %2214 }
0x149d   :  { %v3825_v23 = vpop.eup %3824 }
0x149e   :  { %v2217_v25 = vmul.f32 %v3825_v23, %v2215_v24  ;;  %v3827_v29 = vpop.eup %3826  ;;  %v2224_v38 = vsub.f32 1.0, %v3825_v23  ;;  %v2230_v39 = vmul.f32 %v3825_v23, %v4537_v4  ;;  %v2662_v23 = vld [vmem:[%s4685_s11 + $0x18] sm:$0xff] }
0x149f   :  { %v2306_v30 = vadd.f32 1.0, %v3827_v29  ;;  %v3720_v24 = vpack.c.bf16 %v2662_v23, %v2661_v22 }
0x14a0   :  { %2219 = vrot.lane.b32.xlu0 %v2217_v25, %s3992_s7  ;;  %v2665_v25 = vld [vmem:[%s4686_s12 + $0x10] sm:$0xff] }
0x14a1   :  { %3828 = vrcp.f32 %v2306_v30 }
0x14ab   :  { %v3829_v16 = vpop.eup %3828 }
0x14ac   :  { %v2321_v45 = vsub.f32 1.0, %v3829_v16  ;;  %v2327_v42 = vmul.f32 %v3829_v16, %v4542_v58 }
0x14fc   :  { %v2312_v31 = vpop.permute.xlu1 %2311 }
0x14fd   :  { %v2314_v32 = vmul.f32 %v3829_v16, %v2312_v31  ;;  %v2822_v16 = vld [vmem:[%s4688_s14] sm:$0xff]  ;;  %v2823_v31 = vld [vmem:[%s4688_s14 + $0x8] sm:$0xff] }
0x14ff   :  { %2316 = vrot.lane.b32.xlu1 %v2314_v32, %s3992_s7  ;;  %v3723_v32 = vpack.c.bf16 %v2823_v31, %v2822_v16 }
0x1512   :  { %v2220_v57 = vpop.permute.xlu0 %2219 }
0x1513   :  { %v2222_v33 = vadd.f32 %v2220_v57, %v2127_v15  ;;  %v3711_v15 = vpack.c.bf16 %v2664_v13, %v2663_v47  ;;  %v2824_v57 = vld [vmem:[%s4688_s14 + $0x10] sm:$0xff] }
0x1515   :  { %3830 = vtanh.f32 %v2222_v33  ;;  %v2825_v33 = vld [vmem:[%s4688_s14 + $0x18] sm:$0xff] }
0x151f   :  { %v3831_v34 = vpop.eup %3830 }
0x1520   :  { %2226 = vrot.lane.b32.xlu0 %v3831_v34, %s3993_s5  ;;  %v3726_v34 = vpack.c.bf16 %v2825_v33, %v2824_v57 }
0x1571   :  { %v2317_v35 = vpop.permute.xlu1 %2316 }
0x1572   :  { %v2319_v36 = vadd.f32 %v2317_v35, %v275_v27  ;;  %v3714_v27 = vpack.c.bf16 %v2666_v26, %v2665_v25 }
0x1574   :  { %3832 = vtanh.f32 %v2319_v36 }
0x157e   :  { %v3833_v60 = vpop.eup %3832 }
0x157f   :  { %2323 = vrot.lane.b32.xlu1 %v3833_v60, %s3993_s5 }
0x1592   :  { %v2227_v14 = vpop.permute.xlu0 %2226 }
0x1593   :  { %v2229_v40 = vmul.f32 %v2227_v14, %v2224_v38  ;;  %v3059_v38 = vld [vmem:[%s4687_s13] ss:$0 sm:$0xff] }
0x1595   :  { %v2231_v41 = vadd.f32 %v2230_v39, %v2229_v40 }
0x1597   :  { %2405 = vrot.lane.b32.xlu0 %v2231_v41, %s3993_s5 }
0x15f1   :  { %v2324_v46 = vpop.permute.xlu1 %2323 }
0x15f2   :  { %v2326_v48 = vmul.f32 %v2324_v46, %v2321_v45  ;;  %v2908_v45 = vld [vmem:[%s4690_s16 + $0x8] sm:$0xff] }
0x15f4   :  { %v2328_v49 = vadd.f32 %v2327_v42, %v2326_v48  ;;  %v2909_v42 = vld [vmem:[%s4690_s16 + $0x10] sm:$0x3]  ;;  %v3060_v48 = vld [vmem:[%s4689_s15] ss:$0 sm:$0xff] }
0x15f6   :  { %2330 = vrot.lane.b32.xlu1 %v2328_v49, %s3993_s5 }
0x1609   :  { %v2406_v50 = vpop.permute.xlu0 %2405 }
0x160a   :  { %3498 = vmatmul.mubr.msk.f32.vlgmr.msra.gmra.mrb[24].mxu1 %vm293_vm2, %v2406_v50 }
0x160b   :  { %3522 = vmatprep.mubr.msk.f32.mxu1 %vm3990_vm0, %v3991_v1  ;;  %3712 = vmatpush3.bf16.msra.mxu1 %v3711_v15 }
0x160c   :  { %3713 = vmatprep.subr.bf16.mxu1 %v3989_v0 }
0x160f   :  { %3715 = vmatpush3.bf16.msra.mxu1 %v3714_v27 }
0x1610   :  { %3722 = vmatprep.subr.bf16.mxu1 %v3989_v0 }
0x1668   :  { %v2331_v51 = vpop.permute.xlu1 %2330 }
0x1669   :  { %3487 = vmatmul.mubr.msk.f32.vlgmr.msra.gmra.mrb[28].mxu0 %vm293_vm2, %v2331_v51 }
0x166a   :  { %3504 = vmatprep.mubr.msk.f32.mxu0 %vm3990_vm0, %v3991_v1 }
0x16dd   :  { %v2475_v52 = vpop.f32.mrb[24].mxu1 }
0x16de   :  { %v2486_v53 = vadd.f32 %v2475_v52, %v4298_v2  ;;  %v3499_v54 = vpop.f32.mrb[25].mxu1 }
0x16e0   :  { %2488 = vrot.lane.b32.xlu0 %v2486_v53, %s3992_s7 }
0x173c   :  { %v2400_v55 = vpop.f32.mrb[28].mxu0 }
0x173d   :  { %v2401_v20 = vadd.f32 %v4316_v5, %v2400_v55  ;;  %v3488_v61 = vpop.f32.mrb[29].mxu0 }
0x173f   :  { %v2479_v62 = vadd.f32 %v2475_v52, %v2401_v20 }
0x1741   :  { %v3054_v63 = vmul.f32 -1.442695, %v2479_v62 }
0x1743   :  { %3834 = vpow2.f32 %v3054_v63 }
0x174d   :  { %v3835_v3 = vpop.eup %3834 }
0x174e   :  { %v2483_v4 = vadd.f32 1.0, %v3835_v3 }
0x1750   :  { %3836 = vrcp.f32 %v2483_v4 }
0x1752   :  { %v2489_v7 = vpop.permute.xlu0 %2488 }
0x175a   :  { %v3837_v6 = vpop.eup %3836 }
0x175b   :  { %v2491_v9 = vmul.f32 %v3837_v6, %v2489_v7  ;;  %v2498_v11 = vsub.f32 1.0, %v3837_v6  ;;  %v2504_v12 = vmul.f32 %v3837_v6, %v2231_v41  ;;  %v2907_v41 = vld [vmem:[%s4690_s16] sm:$0xff] }
0x175c   :  { %v3729_v46 = vpack.c.bf16 %v2908_v45, %v2907_v41 }
0x175d   :  { %2493 = vrot.lane.b32.xlu1 %v2491_v9, %s3992_s7 }
0x17cf   :  { %v2494_v10 = vpop.permute.xlu1 %2493 }
0x17d0   :  { %v2496_v2 = vadd.f32 %v2494_v10, %v2401_v20 }
0x17d2   :  { %3838 = vtanh.f32 %v2496_v2 }
0x17dc   :  { %v3839_v58 = vpop.eup %3838 }
0x17dd   :  { %2500 = vrot.lane.b32.xlu0 %v3839_v58, %s3993_s5 }
0x184f   :  { %v2501_v5 = vpop.permute.xlu0 %2500 }
0x1850   :  { %v2503_v8 = vmul.f32 %v2501_v5, %v2498_v11 }
0x1852   :  { %v2505_v44 = vadd.f32 %v2504_v12, %v2503_v8 }
0x1854   :  { %2508 = vrot.lane.b32.xlu1 %v2505_v44, %s3993_s5 }
0x18c6   :  { %v2509_v17 = vpop.permute.xlu1 %2508 }
0x18c7   :  { %v3705_v37 = vpack.c.bf16 %v2509_v17, %v2331_v51 }
0x18c9   :  { %3706 = vmatpush3.bf16.msra.mxu0 %v3705_v37 }
0x18ca   :  { %3707 = vmatprep.subr.bf16.mxu0 %v3989_v0 }
0x18cc   :  { %3505 = vmatmul.mubr.msk.f32.vlgmr.msra.gmra.mrb[30].mxu0 %vm148_vm1, %v2506_v18 }
0x18cd   :  { %3709 = vmatpush3.bf16.msra.mxu0 %v3705_v37  ;;  %3511 = vmatprep.mubr.msk.f32.mxu0 %vm3990_vm0, %v3991_v1 }
0x18ce   :  { %3716 = vmatprep.subr.bf16.mxu0 %v3989_v0 }
0x18d0   :  { %3512 = vmatmul.mubr.msk.f32.vlgmr.msra.gmra.mrb[32].mxu0 %vm148_vm1, %v2585_v59 }
0x18d1   :  { %3718 = vmatpush3.bf16.msra.mxu0 %v3717_v43  ;;  %3533 = vmatprep.mubr.msk.f32.mxu0 %vm3990_vm0, %v3991_v1 }
0x18d2   :  { %3719 = vmatprep.subr.bf16.mxu0 %v3989_v0 }
0x18d5   :  { %3721 = vmatpush3.bf16.msra.mxu0 %v3720_v24 }
0x18d6   :  { %3728 = vmatprep.subr.bf16.mxu0 %v3989_v0 }
0x199f   :  { %v2581_v56 = vpop.f32.mrb[30].mxu0 }
0x19a0   :  { %v3506_v28 = vpop.f32.mrb[31].mxu0  ;;  %3534 = vmatmul.mubr.msk.f32.vlgmr.msra.gmra.mrb[34].mxu0 %vm293_vm2, %v2581_v56 }
0x19a1   :  { %3553 = vmatprep.mubr.msk.f32.mxu0 %vm3990_vm0, %v3991_v1  ;;  %3730 = vmatpush3.bf16.msra.mxu0 %v3729_v46 }
0x19a2   :  { %3551 = vmatprep.subr.mxu0 %v3991_v1 }
0x19a3   :  { %v2655_v29 = vpop.f32.mrb[32].mxu0 }
0x19a4   :  { %v3513_v30 = vpop.f32.mrb[33].mxu0  ;;  %3523 = vmatmul.mubr.msk.f32.vlgmr.msra.gmra.mrb[26].mxu1 %vm293_vm2, %v2655_v29 }
0x19a5   :  { %3544 = vmatprep.mubr.msk.f32.mxu1 %vm3990_vm0, %v3991_v1  ;;  %3724 = vmatpush3.bf16.msra.mxu1 %v3723_v32  ;;  %v3062_v1 = vld [vmem:[%s4691_s17] ss:$0 sm:$0xff] }
0x19a6   :  { %3725 = vmatprep.subr.bf16.mxu1 %v3989_v0  ;;  %3552 = vmatpush3.msk.msra.mxu0 %vm2921_vm3, %v2909_v42 }
0x19a9   :  { %3727 = vmatpush3.bf16.msra.mxu1 %v3726_v34 }
0x1a73   :  { %v2809_v35 = vpop.f32.mrb[34].mxu0 }
0x1a74   :  { %v3535_v36 = vpop.f32.mrb[35].mxu0 }
0x1a77   :  { %v2736_v60 = vpop.f32.mrb[26].mxu1 }
0x1a78   :  { %v2810_v14 = vadd.f32 %v2809_v35, %v2736_v60  ;;  %v3524_v39 = vpop.f32.mrb[27].mxu1 }
0x1a7a   :  { %v2820_v0 = vadd.f32 %v3059_v38, %v2810_v14 }
0x1a7c   :  { %v2821_v40 = vmax.f32 %v2820_v0, 0.0 }
0x1a7e   :  { %3545 = vmatmul.mubr.msk.f32.vlgmr.msra.gmra.mrb[28].mxu1 %vm293_vm2, %v2821_v40 }
0x1b51   :  { %v2902_v49 = vpop.f32.mrb[28].mxu1 }
0x1b52   :  { %v2903_v50 = vadd.f32 %v3060_v48, %v2902_v49  ;;  %v3546_v51 = vpop.f32.mrb[29].mxu1 }
0x1b54   :  { %v2906_v52 = vmax.f32 %v2903_v50, 0.0 }
0x1b56   :  { %3554 = vmatmul.mubr.msk.f32.vlgmr.msra.gmra.mrb[36].mxu0 %vm2917_vm4, %v2906_v52 }
0x1c29   :  { %v2991_v53 = vpop.f32.mrb[36].mxu0 }
0x1c2a   :  { %v2992_v54 = vadd.f32 %v3062_v1, %v2991_v53  ;;  %v3555_v55 = vpop.f32.mrb[37].mxu0 }
0x1c2c   :  { %2996 = vst.msk [vmem:[%s4692_s18] sm:$0xff] %vm2995_vm5, %v2992_v54 }
0x1c2d   :  { %3001 = vsyncpa [#allocation3], 1 }
0x1c2e   :  { %3002 = vsyncpa [#allocation5], 1 }
0x1c2f   :  { %3003 = vsyncpa [#allocation8], 1 }
0x1c30   :  { %3004 = vsyncpa [#allocation11], 1 }

</bundles_post_ra>
